<compile_context>
chip_gen: v7x
topology: tpu7x:2x2x1
jax: 0.10.0
libtpu: 0.0.40
codegen_flags: <defaults>
</compile_context>

<pallas_src>
import functools

import jax
import jax.numpy as jnp
import numpy as np
from jax.experimental import pallas as pl
from jax.experimental.pallas import tpu as pltpu

LANE = 128   # lane padding for feature dims AND the node dim (MXU contraction depth)


def _round_up(v, m):
    return (v + m - 1) // m * m


# ----------------------------------------------------------------------------
# Fused Pallas kernel: whole ChebResBlock for one batch element per grid step.
# ----------------------------------------------------------------------------
def _fused_resblock_kernel(K, has_sc_conv, fc_dt,
                           L_ref, x_ref, w1_ref, b1_ref, w2_ref, b2_ref, *rest):
    """
    L_ref : (Np, Np) f32       resident padded Laplacian (kept f32: recurrence accuracy)
    x_ref : (1, Np, Fp) fc_dt  per-batch input block (pipelined)
    w1_ref: (K*Fp, Cp) fc_dt   row-stacked per-order cheby1 weights (resident)
    w2_ref: (K*Cp, Cp) fc_dt   row-stacked per-order cheby2 weights (resident)
    b*_ref: (1, Cp) f32        biases (resident)
    wsc/bsc (optional)         projection-shortcut weights / bias
    o_ref : (1, Np, Cp)        per-batch output block
    """
    if has_sc_conv:
        wsc_ref, bsc_ref, o_ref = rest
    else:
        (o_ref,) = rest

    L = L_ref[...]                                   # f32
    x0 = x_ref[0]                                    # (Np, Fp), fc_dt

    def cheb_stack(t0):
        """[T_0 | T_1 | ... | T_{K-1}] concatenated along the feature axis (fc_dt).
        The recurrence itself runs in f32 (f32 L, f32 accumulation); each T_k is
        cast to fc_dt exactly once."""
        ts = [t0.astype(fc_dt)]
        if K > 1:
            t_prev = t0.astype(jnp.float32)
            t_cur = jnp.dot(L, t_prev, preferred_element_type=jnp.float32)
            ts.append(t_cur.astype(fc_dt))
            for _ in range(2, K):
                t_next = 2.0 * jnp.dot(L, t_cur,
                                       preferred_element_type=jnp.float32) - t_prev
                ts.append(t_next.astype(fc_dt))
                t_prev, t_cur = t_cur, t_next
        return jnp.concatenate(ts, axis=-1) if len(ts) > 1 else ts[0]

    # ---- first recurrence on x; ONE K*Fp-deep contraction per weight set ----
    T = cheb_stack(x0)                                               # (Np, K*Fp)
    acc1 = jnp.dot(T, w1_ref[...], preferred_element_type=jnp.float32)
    if has_sc_conv:
        sc = jnp.dot(T, wsc_ref[...], preferred_element_type=jnp.float32) + bsc_ref[...]
    else:
        sc = x0.astype(jnp.float32)                   # identity shortcut: Fp == Cp

    h = jnp.maximum(acc1 + b1_ref[...], 0.0)          # (Np, Cp), f32

    # ---- second recurrence on h -------------------------------------------
    S = cheb_stack(h)                                                # (Np, K*Cp)
    acc2 = jnp.dot(S, w2_ref[...], preferred_element_type=jnp.float32)

    out = jnp.maximum(acc2 + b2_ref[...] + sc, 0.0)
    o_ref[0] = out.astype(o_ref.dtype)


# ----------------------------------------------------------------------------
# One-time setup: pad the Laplacian (hoisted out of the forward pass).
# ----------------------------------------------------------------------------
def prepare_laplacian(L):
    N = L.shape[0]
    Np = _round_up(N, LANE)
    if Np == N and L.dtype == jnp.float32:
        return jnp.asarray(L)
    return jnp.zeros((Np, Np), jnp.float32).at[:N, :N].set(L.astype(jnp.float32))


# ----------------------------------------------------------------------------
# Wrapper: padding + pallas_call (whole residual block in one kernel).
# ----------------------------------------------------------------------------
def cheb_res_block(x_bnf, L_pad, params, out_channels):
    """Fused ChebResBlock forward.
    x_bnf: (B, N, Fin);  L_pad: (Np, Np) f32 from prepare_laplacian.
    Returns (B, N, out_channels); bf16 when params' weights are bf16, else f32."""
    B, N, Fin = x_bnf.shape
    Np = L_pad.shape[0]
    assert Np == _round_up(N, LANE), "L_pad must be padded to round_up(N, 128)"
    Fp = _round_up(Fin, LANE)
    Cp = _round_up(out_channels, LANE)

    w1, b1 = params["cheby1"]
    w2, b2 = params["cheby2"]
    has_sc = params["shortcut"] is not None
    if not has_sc:
        # assert on the UNPADDED dims (padded dims would silently match).
        assert Fin == out_channels, "identity shortcut requires in_channels == out_channels"
    K = w1.shape[0] // Fp

    use_bf16 = (w1.dtype == jnp.bfloat16)
    fc_dt = jnp.bfloat16 if use_bf16 else jnp.float32
    out_dt = fc_dt                              # bf16 output halves writeback when bf16

    # Zero-padding is exact: padded feature columns see zero weights; padded node
    # rows never feed real rows because L's padded rows/cols are zero.
    if N == Np and Fin == Fp and x_bnf.dtype == fc_dt:
        x_pad = x_bnf                                              # skip the copy
    else:
        x_pad = jnp.zeros((B, Np, Fp), fc_dt).at[:, :N, :Fin].set(x_bnf.astype(fc_dt))

    vmem_full = pl.BlockSpec(memory_space=pltpu.MemorySpace.VMEM)   # resident, single copy
    inputs = [L_pad, x_pad, w1, b1, w2, b2]
    in_specs = [
        vmem_full,                                        # L
        pl.BlockSpec((1, Np, Fp), lambda b: (b, 0, 0)),   # x: pipelined per batch
        vmem_full, vmem_full, vmem_full, vmem_full,       # w1, b1, w2, b2
    ]
    if has_sc:
        wsc, bsc = params["shortcut"]
        inputs += [wsc, bsc]
        in_specs += [vmem_full, vmem_full]

    # ---- VMEM budget + device-aware limit -----------------------------------
    wb = 2 if use_bf16 else 4
    est = (Np * Np * 4
           + (K * Fp * Cp + K * Cp * Cp + (K * Fp * Cp if has_sc else 0)) * wb
           + 3 * Cp * 4
           + 2 * Np * Fp * wb + 2 * Np * Cp * wb          # double-buffered x / out blocks
           + Np * K * (Fp + Cp) * wb                      # stacked T / S
           + 8 * Np * max(Fp, Cp) * 4)                    # live f32 intermediates
    try:
        vmem_cap = int(pltpu.get_tpu_info().vmem_capacity_bytes)
    except Exception:
        vmem_cap = 128 * 1024 * 1024
    vmem_limit = int(min(max(2 * est, 32 << 20), max(vmem_cap - (8 << 20), 32 << 20)))

    # ---- advisory cost hint so XLA schedules surrounding pad/slice correctly --
    flops_per_b = (2 * (K - 1) * Np * Np * (Fp + Cp)               # L @ T  /  L @ S
                   + 2 * Np * K * Fp * Cp                          # cheby1
                   + 2 * Np * K * Cp * Cp                          # cheby2
                   + (2 * Np * K * Fp * Cp if has_sc else 0))      # shortcut
    bytes_accessed = (B * Np * (Fp + Cp) * wb + Np * Np * 4
                      + (K * Fp * Cp + K * Cp * Cp
                         + (K * Fp * Cp if has_sc else 0)) * wb + 3 * Cp * 4)
    cost = pl.CostEstimate(flops=int(B * flops_per_b), transcendentals=0,
                           bytes_accessed=int(bytes_accessed))

    kernel = functools.partial(_fused_resblock_kernel, K, has_sc, fc_dt)
    y_pad = pl.pallas_call(
        kernel,
        out_shape=jax.ShapeDtypeStruct((B, Np, Cp), out_dt),
        grid=(B,),                                        # exactly parallel over batch
        in_specs=in_specs,
        out_specs=pl.BlockSpec((1, Np, Cp), lambda b: (b, 0, 0)),
        compiler_params=pltpu.CompilerParams(
            dimension_semantics=("parallel",),
            vmem_limit_bytes=vmem_limit,
        ),
        cost_estimate=cost,
    )(*inputs)
    return y_pad[:, :N, :out_channels]


# ----------------------------------------------------------------------------
# Parameter construction (deterministic, mirrors the PyTorch __init__).
# ----------------------------------------------------------------------------
def make_chebconv_params(key, in_channels, out_channels, K, dtype=jnp.float32):
    """Xavier-normal (relu gain) fc weight, zero bias.
    Returns ((row-stacked padded weights (K*Fp, Cp), padded bias (1, Cp)), raw (w, b))."""
    gain = float(np.sqrt(2.0))                        # calculate_gain('relu')
    fan_in, fan_out = K * in_channels, out_channels
    std = gain * float(np.sqrt(2.0 / (fan_in + fan_out)))
    w = jax.random.normal(key, (out_channels, K * in_channels), jnp.float32) * std
    b = jnp.zeros((out_channels,), jnp.float32)

    # fc(concat([Tx_0..Tx_{K-1}])) == concat_k(T_k) @ stack_k(W_k),
    # with W_k = w.T[k*Fin:(k+1)*Fin, :] row-stacked along the contraction axis.
    w_k = w.T.reshape(K, in_channels, out_channels)
    Fp = _round_up(in_channels, LANE)
    Cp = _round_up(out_channels, LANE)
    w_pad = (jnp.zeros((K, Fp, Cp), jnp.float32)
             .at[:, :in_channels, :out_channels].set(w_k)
             .reshape(K * Fp, Cp).astype(dtype))
    b_pad = jnp.zeros((1, Cp), jnp.float32).at[0, :out_channels].set(b)
    return (w_pad, b_pad), (w, b)


def make_resblock_params(key, in_channels, out_channels, K, dtype=jnp.float32):
    ks = jax.random.split(key, 3)
    params, raw = {}, {}
    if in_channels != out_channels:
        params["shortcut"], raw["shortcut"] = make_chebconv_params(
            ks[0], in_channels, out_channels, K, dtype)
    else:
        params["shortcut"], raw["shortcut"] = None, None
    params["cheby1"], raw["cheby1"] = make_chebconv_params(
        ks[1], in_channels, out_channels, K, dtype)
    params["cheby2"], raw["cheby2"] = make_chebconv_params(
        ks[2], out_channels, out_channels, K, dtype)
    return params, raw


def cast_resblock_params(params, dtype):
    """One-time host cast of the fc weight stacks (biases stay f32)."""
    return {name: (None if p is None else (p[0].astype(dtype), p[1]))
            for name, p in params.items()}


# ----------------------------------------------------------------------------
# Pure-JAX reference (line-by-line port of the PyTorch module) for validation.
# ----------------------------------------------------------------------------
def cheb_conv_ref(L, x, w, b, K):
    B, N, Fin = x.shape
    x0 = jnp.transpose(x, (1, 0, 2)).reshape(N, B * Fin)
    outs = [x0]
    if K > 1:
        T0, T1 = x0, L @ x0
        outs.append(T1)
        for _ in range(2, K):
            T2 = 2.0 * (L @ T1) - T0
            outs.append(T2)
            T0, T1 = T1, T2
    outs = [o.reshape(N, B, Fin) for o in outs]
    out = jnp.concatenate(outs, axis=2).reshape(N * B, K * Fin)
    out = out @ w.T + b
    return jnp.transpose(out.reshape(N, B, -1), (1, 0, 2))


def cheb_res_block_ref(x, L, raw, K):
    if raw["shortcut"] is not None:
        sc = cheb_conv_ref(L, x, *raw["shortcut"], K)
    else:
        sc = x
    h = jax.nn.relu(cheb_conv_ref(L, x, *raw["cheby1"], K))
    return jax.nn.relu(cheb_conv_ref(L, h, *raw["cheby2"], K) + sc)


# ----------------------------------------------------------------------------
if __name__ == "__main__":
    B, N, IN_C, OUT_C, K = 2, 16, 4, 8, 3

    key = jax.random.PRNGKey(0)
    k_x, k_adj, k_p, k_p2, k_x2 = jax.random.split(key, 5)

    # Deterministic symmetric normalized Laplacian.
    A = jax.random.uniform(k_adj, (N, N), jnp.float32)
    A = 0.5 * (A + A.T)
    A = A * (1.0 - jnp.eye(N, dtype=jnp.float32))
    d = jnp.sum(A, axis=1)
    d_inv_sqrt = 1.0 / jnp.sqrt(d)
    L = jnp.eye(N, dtype=jnp.float32) - (d_inv_sqrt[:, None] * A * d_inv_sqrt[None, :])
    L_pad = prepare_laplacian(L)     # one-time setup, hoisted out of the forward

    x = jax.random.normal(k_x, (B, N, IN_C), jnp.float32)

    # --- case 1: projection shortcut (in_channels != out_channels), f32 MXU ---
    params, raw = make_resblock_params(k_p, IN_C, OUT_C, K)
    y = jax.block_until_ready(cheb_res_block(x, L_pad, params, OUT_C))
    y_ref = cheb_res_block_ref(x, L, raw, K)
    np.testing.assert_allclose(np.asarray(y), np.asarray(y_ref), rtol=1e-4, atol=1e-4)

    # --- case 2: bf16 weights / activations / output (f32 Laplacian recurrence
    #             and f32 accumulation); looser tolerance for bf16 rounding. ---
    params_bf16 = cast_resblock_params(params, jnp.bfloat16)
    y_bf16 = jax.block_until_ready(cheb_res_block(x, L_pad, params_bf16, OUT_C))
    np.testing.assert_allclose(np.asarray(y_bf16).astype(np.float32),
                               np.asarray(y_ref), rtol=5e-2, atol=1e-1)

    # --- case 3: identity shortcut branch (in_channels == out_channels) ---
    params2, raw2 = make_resblock_params(k_p2, OUT_C, OUT_C, K)
    x2 = jax.random.normal(k_x2, (B, N, OUT_C), jnp.float32)
    y2 = jax.block_until_ready(cheb_res_block(x2, L_pad, params2, OUT_C))
    y2_ref = cheb_res_block_ref(x2, L, raw2, K)
    np.testing.assert_allclose(np.asarray(y2), np.asarray(y2_ref), rtol=1e-4, atol=1e-4)

    print("KERNEL_OK")
</pallas_src>

<mosaic_0001>
module attributes {stable_mosaic.version = 11 : i64} {
  func.func @_fused_resblock_kernel(%arg0: i32, %arg1: memref<128x128xf32, #tpu.memory_space<vmem>>, %arg2: memref<1x128x128xf32, #tpu.memory_space<vmem>>, %arg3: memref<384x128xf32, #tpu.memory_space<vmem>>, %arg4: memref<1x128xf32, #tpu.memory_space<vmem>>, %arg5: memref<384x128xf32, #tpu.memory_space<vmem>>, %arg6: memref<1x128xf32, #tpu.memory_space<vmem>>, %arg7: memref<384x128xf32, #tpu.memory_space<vmem>>, %arg8: memref<1x128xf32, #tpu.memory_space<vmem>>, %arg9: memref<1x128x128xf32, #tpu.memory_space<vmem>>) attributes {dimension_semantics = [#tpu.dimension_semantics<parallel>], iteration_bounds = array<i64: 2>, scalar_prefetch = 0 : i64, scratch_operands = 0 : i64, tpu.core_type = #tpu.core_type<tc>, window_params = [{pipeline_mode = #tpu.pipeline_mode<synchronous>, transform_indices = @transform_0, window_bounds = array<i64: 128, 128>}, {transform_indices = @transform_1, window_bounds = array<i64: 1, 128, 128>}, {pipeline_mode = #tpu.pipeline_mode<synchronous>, transform_indices = @transform_2, window_bounds = array<i64: 384, 128>}, {pipeline_mode = #tpu.pipeline_mode<synchronous>, transform_indices = @transform_3, window_bounds = array<i64: 1, 128>}, {pipeline_mode = #tpu.pipeline_mode<synchronous>, transform_indices = @transform_4, window_bounds = array<i64: 384, 128>}, {pipeline_mode = #tpu.pipeline_mode<synchronous>, transform_indices = @transform_5, window_bounds = array<i64: 1, 128>}, {pipeline_mode = #tpu.pipeline_mode<synchronous>, transform_indices = @transform_6, window_bounds = array<i64: 384, 128>}, {pipeline_mode = #tpu.pipeline_mode<synchronous>, transform_indices = @transform_7, window_bounds = array<i64: 1, 128>}, {transform_indices = @transform_8, window_bounds = array<i64: 1, 128, 128>}]} {
    %c0 = arith.constant 0 : index
    %c0_0 = arith.constant 0 : index
    %0 = vector.load %arg1[%c0, %c0_0] : memref<128x128xf32, #tpu.memory_space<vmem>>, vector<128x128xf32>
    %c0_1 = arith.constant 0 : index
    %c0_2 = arith.constant 0 : index
    %c0_3 = arith.constant 0 : index
    %1 = vector.load %arg2[%c0_1, %c0_2, %c0_3] : memref<1x128x128xf32, #tpu.memory_space<vmem>>, vector<1x128x128xf32>
    %2 = vector.shape_cast %1 : vector<1x128x128xf32> to vector<128x128xf32>
    %cst = arith.constant dense<0.000000e+00> : vector<128x128xf32>
    %3 = tpu.matmul %0, %2, %cst {dimension_numbers = #tpu.dot_dimension_numbers<[1], [0], [0], [1], [0, 0, 1, 1], [], []>} : vector<128x128xf32>, vector<128x128xf32>, vector<128x128xf32> -> vector<128x128xf32>
    %cst_4 = arith.constant dense<0.000000e+00> : vector<128x128xf32>
    %4 = tpu.matmul %0, %3, %cst_4 {dimension_numbers = #tpu.dot_dimension_numbers<[1], [0], [0], [1], [0, 0, 1, 1], [], []>} : vector<128x128xf32>, vector<128x128xf32>, vector<128x128xf32> -> vector<128x128xf32>
    %cst_5 = arith.constant 2.000000e+00 : f32
    %5 = vector.broadcast %cst_5 : f32 to vector<128x128xf32>
    %6 = arith.mulf %5, %4 : vector<128x128xf32>
    %7 = arith.subf %6, %2 : vector<128x128xf32>
    %8 = tpu.concatenate %2, %3, %7 in 1 : vector<128x128xf32>, vector<128x128xf32>, vector<128x128xf32> -> vector<128x384xf32>
    %c0_6 = arith.constant 0 : index
    %c0_7 = arith.constant 0 : index
    %9 = vector.load %arg3[%c0_6, %c0_7] : memref<384x128xf32, #tpu.memory_space<vmem>>, vector<384x128xf32>
    %cst_8 = arith.constant dense<0.000000e+00> : vector<128x128xf32>
    %10 = tpu.matmul %8, %9, %cst_8 {dimension_numbers = #tpu.dot_dimension_numbers<[1], [0], [0], [1], [0, 0, 1, 1], [], []>} : vector<128x384xf32>, vector<384x128xf32>, vector<128x128xf32> -> vector<128x128xf32>
    %c0_9 = arith.constant 0 : index
    %c0_10 = arith.constant 0 : index
    %11 = vector.load %arg7[%c0_9, %c0_10] : memref<384x128xf32, #tpu.memory_space<vmem>>, vector<384x128xf32>
    %cst_11 = arith.constant dense<0.000000e+00> : vector<128x128xf32>
    %12 = tpu.matmul %8, %11, %cst_11 {dimension_numbers = #tpu.dot_dimension_numbers<[1], [0], [0], [1], [0, 0, 1, 1], [], []>} : vector<128x384xf32>, vector<384x128xf32>, vector<128x128xf32> -> vector<128x128xf32>
    %c0_12 = arith.constant 0 : index
    %c0_13 = arith.constant 0 : index
    %13 = vector.load %arg8[%c0_12, %c0_13] : memref<1x128xf32, #tpu.memory_space<vmem>>, vector<1x128xf32>
    %14 = vector.broadcast %13 : vector<1x128xf32> to vector<128x128xf32>
    %15 = arith.addf %12, %14 : vector<128x128xf32>
    %c0_14 = arith.constant 0 : index
    %c0_15 = arith.constant 0 : index
    %16 = vector.load %arg4[%c0_14, %c0_15] : memref<1x128xf32, #tpu.memory_space<vmem>>, vector<1x128xf32>
    %17 = vector.broadcast %16 : vector<1x128xf32> to vector<128x128xf32>
    %18 = arith.addf %10, %17 : vector<128x128xf32>
    %cst_16 = arith.constant 0.000000e+00 : f32
    %19 = vector.broadcast %cst_16 : f32 to vector<128x128xf32>
    %20 = arith.maximumf %18, %19 : vector<128x128xf32>
    %cst_17 = arith.constant dense<0.000000e+00> : vector<128x128xf32>
    %21 = tpu.matmul %0, %20, %cst_17 {dimension_numbers = #tpu.dot_dimension_numbers<[1], [0], [0], [1], [0, 0, 1, 1], [], []>} : vector<128x128xf32>, vector<128x128xf32>, vector<128x128xf32> -> vector<128x128xf32>
    %cst_18 = arith.constant dense<0.000000e+00> : vector<128x128xf32>
    %22 = tpu.matmul %0, %21, %cst_18 {dimension_numbers = #tpu.dot_dimension_numbers<[1], [0], [0], [1], [0, 0, 1, 1], [], []>} : vector<128x128xf32>, vector<128x128xf32>, vector<128x128xf32> -> vector<128x128xf32>
    %cst_19 = arith.constant 2.000000e+00 : f32
    %23 = vector.broadcast %cst_19 : f32 to vector<128x128xf32>
    %24 = arith.mulf %23, %22 : vector<128x128xf32>
    %25 = arith.subf %24, %20 : vector<128x128xf32>
    %26 = tpu.concatenate %20, %21, %25 in 1 : vector<128x128xf32>, vector<128x128xf32>, vector<128x128xf32> -> vector<128x384xf32>
    %c0_20 = arith.constant 0 : index
    %c0_21 = arith.constant 0 : index
    %27 = vector.load %arg5[%c0_20, %c0_21] : memref<384x128xf32, #tpu.memory_space<vmem>>, vector<384x128xf32>
    %cst_22 = arith.constant dense<0.000000e+00> : vector<128x128xf32>
    %28 = tpu.matmul %26, %27, %cst_22 {dimension_numbers = #tpu.dot_dimension_numbers<[1], [0], [0], [1], [0, 0, 1, 1], [], []>} : vector<128x384xf32>, vector<384x128xf32>, vector<128x128xf32> -> vector<128x128xf32>
    %c0_23 = arith.constant 0 : index
    %c0_24 = arith.constant 0 : index
    %29 = vector.load %arg6[%c0_23, %c0_24] : memref<1x128xf32, #tpu.memory_space<vmem>>, vector<1x128xf32>
    %30 = vector.broadcast %29 : vector<1x128xf32> to vector<128x128xf32>
    %31 = arith.addf %28, %30 : vector<128x128xf32>
    %32 = arith.addf %31, %15 : vector<128x128xf32>
    %cst_25 = arith.constant 0.000000e+00 : f32
    %33 = vector.broadcast %cst_25 : f32 to vector<128x128xf32>
    %34 = arith.maximumf %32, %33 : vector<128x128xf32>
    %c0_26 = arith.constant 0 : index
    %c0_27 = arith.constant 0 : index
    %c0_28 = arith.constant 0 : index
    %35 = vector.load %arg9[%c0_26, %c0_27, %c0_28] : memref<1x128x128xf32, #tpu.memory_space<vmem>>, vector<1x128x128xf32>
    %36 = vector.shape_cast %35 : vector<1x128x128xf32> to vector<128x128xf32>
    %37 = vector.shape_cast %34 : vector<128x128xf32> to vector<1x128x128xf32>
    tpu.vector_store %arg9[%c0_26, %c0_27, %c0_28], %37 {strides = array<i32>} : memref<1x128x128xf32, #tpu.memory_space<vmem>>, vector<1x128x128xf32>,
    return
  }
  func.func @transform_0(%arg0: i32) -> (i32, i32) {
    %c0_i32 = arith.constant 0 : i32
    %c0_i32_0 = arith.constant 0 : i32
    %c0_i32_1 = arith.constant 0 : i32
    return %c0_i32, %c0_i32_0 : i32, i32
  }
  func.func @transform_1(%arg0: i32) -> (i32, i32, i32) {
    %c0_i32 = arith.constant 0 : i32
    %c0_i32_0 = arith.constant 0 : i32
    %c0_i32_1 = arith.constant 0 : i32
    return %arg0, %c0_i32, %c0_i32_0 : i32, i32, i32
  }
  func.func @transform_2(%arg0: i32) -> (i32, i32) {
    %c0_i32 = arith.constant 0 : i32
    %c0_i32_0 = arith.constant 0 : i32
    %c0_i32_1 = arith.constant 0 : i32
    return %c0_i32, %c0_i32_0 : i32, i32
  }
  func.func @transform_3(%arg0: i32) -> (i32, i32) {
    %c0_i32 = arith.constant 0 : i32
    %c0_i32_0 = arith.constant 0 : i32
    %c0_i32_1 = arith.constant 0 : i32
    return %c0_i32, %c0_i32_0 : i32, i32
  }
  func.func @transform_4(%arg0: i32) -> (i32, i32) {
    %c0_i32 = arith.constant 0 : i32
    %c0_i32_0 = arith.constant 0 : i32
    %c0_i32_1 = arith.constant 0 : i32
    return %c0_i32, %c0_i32_0 : i32, i32
  }
  func.func @transform_5(%arg0: i32) -> (i32, i32) {
    %c0_i32 = arith.constant 0 : i32
    %c0_i32_0 = arith.constant 0 : i32
    %c0_i32_1 = arith.constant 0 : i32
    return %c0_i32, %c0_i32_0 : i32, i32
  }
  func.func @transform_6(%arg0: i32) -> (i32, i32) {
    %c0_i32 = arith.constant 0 : i32
    %c0_i32_0 = arith.constant 0 : i32
    %c0_i32_1 = arith.constant 0 : i32
    return %c0_i32, %c0_i32_0 : i32, i32
  }
  func.func @transform_7(%arg0: i32) -> (i32, i32) {
    %c0_i32 = arith.constant 0 : i32
    %c0_i32_0 = arith.constant 0 : i32
    %c0_i32_1 = arith.constant 0 : i32
    return %c0_i32, %c0_i32_0 : i32, i32
  }
  func.func @transform_8(%arg0: i32) -> (i32, i32, i32) {
    %c0_i32 = arith.constant 0 : i32
    %c0_i32_0 = arith.constant 0 : i32
    %c0_i32_1 = arith.constant 0 : i32
    return %arg0, %c0_i32, %c0_i32_0 : i32, i32, i32
  }
}

</mosaic_0001>

<bundles_post_ra>
// kernel: tpu_custom_call.1
= control target key start
LH: loop header
LB: loop body
LE: loop exit
PB: predicated region body
PF: predicated region fallthrough
CT: control target
= control target key end

     0   :  { %13 = vsyncpa [#allocation3], 0  ;;  %s4822_s0 = inlined_call_operand.hbm [shape: f32[128,128], index: 0, kind: input, shape index: {}]   ;;  %s4823_s1 = inlined_call_operand.hbm [shape: f32[2,128,128], index: 1, kind: input, shape index: {}]   ;;  %s4824_s2 = inlined_call_operand.hbm [shape: f32[384,128], index: 2, kind: input, shape index: {}]   ;;  %s4825_s3 = inlined_call_operand.vmem [shape: f32[1,128], index: 3, kind: input, shape index: {}]   ;;  %s4826_s4 = inlined_call_operand.hbm [shape: f32[384,128], index: 4, kind: input, shape index: {}]   ;;  %s4827_s5 = inlined_call_operand.vmem [shape: f32[1,128], index: 5, kind: input, shape index: {}]   ;;  %s4828_s6 = inlined_call_operand.hbm [shape: f32[384,128], index: 6, kind: input, shape index: {}]   ;;  %s4829_s7 = inlined_call_operand.vmem [shape: f32[1,128], index: 7, kind: input, shape index: {}]   ;;  %s4830_s8 = inlined_call_operand.hbm [shape: f32[2,128,128], index: 8, kind: output, shape index: {}]  }
   0x1   :  { %14 = vsyncpa [#allocation6], 0 }
   0x2   :  { %16 = vsyncpa [#allocation6 + $0x1], 0 }
   0x3   :  { %17 = vsyncpa [#allocation9], 0 }
   0x4   :  { %18 = vsyncpa [#allocation4], 0 }
   0x5   :  { %20 = vsyncpa [#allocation4 + $0x1], 0  ;;  %s3919_s27 = smov 0   ;;  %s3921_s28 = smov 0  }
   0x6   :  { %s3923_s29 = smov 0   ;;  %s3925_s30 = smov 0  }
   0x7 LB: > { %4836 = sst [smem:[#allocation17_spill]] %s3850_s27  ;;  %s3940_s9 = sadd.s32 4294967295, %s3862_s30   ;;  %s3862_s30 = sphi %s3925_s30, %s4873_s30   ;;  %s3858_s29 = sphi %s3923_s29, %s4872_s29   ;;  %s3854_s28 = sphi %s3921_s28, %s4871_s28   ;;  %s3850_s27 = sphi %s3919_s27, %s4870_s27  }
   0x8   : > { %s2284_s10 = sadd.s32 4294967294, %s3862_s30   ;;  %p67_p0 = scmp.ne.s32.totalorder %s3854_s28, %s3850_s27 }
   0x9   : > { %p4831_p1 = scmp.eq.s32.totalorder %s3940_s9, 0  ;;  %p223_p3 = scmp.eq.s32.totalorder %s2284_s10, 1 }
   0xa   : > { %p2285_p5 = scmp.ge.s32.totalorder %s3862_s30, 1  ;;  %p230_p7 = scmp.lt.s32.totalorder %s3862_s30, 3 }
   0xb   : > { %p3949_p4 = por %p4831_p1, %p67_p0  ;;  %p3954_p6 = por %p223_p3, %p67_p0 }
   0xc   : > { %p3959_p8 = pnand %p2285_p5, %p230_p7  ;;  %s3864_s14 = smov [#allocation7]  }
   0xd   : > { %s4837_s11 = scalar_select %p3949_p4, 1, 0 }
   0xe   : > { %s4838_s12 = scalar_select %p3954_p6, 1, 0 }
   0xf   : > { %s4840_s13 = scalar_select %p3959_p8, 1, 0 }
  0x10   : > { %4839 = sst [smem:[#allocation18_spill]] %s4838_s12  ;;  %p3555_p10 = pneg %p3959_p8 }
  0x11   : > { %s255_s15 = sshll.u32 %s3864_s14, 4  ;;  %s3865_s17 = smov [#allocation8]   ;;  %s3966_s15 = int_to_ptr.vmem [resolvable:$true] %s255_s15 }
  0x12   : > { %p3970_p11 = pnand %p3555_p10, %p4831_p1  ;;  %s271_s18 = sshll.u32 %s3865_s17, 4  ;;  %s3974_s18 = int_to_ptr.vmem [resolvable:$true] %s271_s18 }
  0x13   : > { %s3866_s19 = smov [#allocation2]   ;;  %s3642_s23 = scalar_lea.hbm %s4824_s2, 6144 }
  0x14   : > { %s3976_s20 = sshll.u32 %s3866_s19, 4  ;;  %p3643_p12 = scmp.ne.s32.totalorder %s4824_s2, %s3642_s23  ;;  %s243_s20 = int_to_ptr.vmem [resolvable:$true] %s3976_s20 }
  0x15   : > { %p3986_p13 = pneg %p3970_p11  ;;  %p3649_p5 = scmp.lt.u32.totalorder %s3642_s23, %s4824_s2 }
  0x17   : > { %p3645_p0 = pnand %p3986_p13, %p3643_p12 }
  0x19   : > { %p3646_p3 = pneg %p3645_p0 }
  0x1b   : > { %p3651_p7 = pnand %p3649_p5, %p3646_p3 }
  0x1d   : > { %3654 = shalt.err (!%p3651_p7)
}
  0x1e   : > { %s3655_s17 = scalar_lea.vmem %s3966_s15, 6144  ;;  %p3663_p2 = scmp.lt.s32.totalorder %s3966_s15, %s3966_s15 }
  0x1f   : > { %p3656_p10 = scmp.ne.s32.totalorder %s3966_s15, %s3655_s17  ;;  %p3664_p6 = scmp.lt.s32.totalorder %s3655_s17, %s3655_s17 }
  0x21   : > { %p3658_p9 = pnand %p3656_p10, %p3986_p13  ;;  %p3665_p12 = por %p3664_p6, %p3663_p2 }
  0x23   : > { %p3659_p1 = pneg %p3658_p9 }
  0x25   : > { %p3666_p0 = pnand %p3665_p12, %p3659_p1 }
  0x27   : > { %3669 = shalt.err (!%p3666_p0)
}
  0x28   : > { %s3867_s19 = smov 128   ;;  %s3868_s21 = smov 8  }
  0x29   : > { %3561 = dma.hbm_to_vmem [thread:$0]  (!%p3970_p11), %s4824_s2, 6144, %s3966_s15, [#allocation6], %s3867_s19, %s3867_s19, %s3868_s21  }
  0x2a   : > { %s3670_s10 = scalar_lea.hbm %s4826_s4, 6144 }
  0x2b   : > { %p3671_p1 = scmp.ne.s32.totalorder %s4826_s4, %s3670_s10  ;;  %p3677_p9 = scmp.lt.u32.totalorder %s3670_s10, %s4826_s4 }
  0x2d   : > { %p3673_p2 = pnand %p3671_p1, %p3986_p13 }
  0x2f   : > { %p3674_p6 = pneg %p3673_p2 }
  0x31   : > { %p3679_p3 = pnand %p3677_p9, %p3674_p6 }
  0x33   : > { %3682 = shalt.err (!%p3679_p3)
}
  0x34   : > { %s3683_s15 = scalar_lea.vmem %s3974_s18, 6144  ;;  %p3691_p12 = scmp.lt.s32.totalorder %s3974_s18, %s3974_s18 }
  0x35   : > { %p3684_p5 = scmp.ne.s32.totalorder %s3974_s18, %s3683_s15  ;;  %p3692_p0 = scmp.lt.s32.totalorder %s3683_s15, %s3683_s15 }
  0x37   : > { %p3686_p7 = pnand %p3684_p5, %p3986_p13  ;;  %p3693_p1 = por %p3692_p0, %p3691_p12 }
  0x39   : > { %p3687_p10 = pneg %p3686_p7 }
  0x3b   : > { %p3694_p2 = pnand %p3693_p1, %p3687_p10 }
  0x3d   : > { %3697 = shalt.err (!%p3694_p2)
}
  0x3e   : > { %3564 = dma.hbm_to_vmem [thread:$0]  (!%p3970_p11), %s4826_s4, 6144, %s3974_s18, [#allocation9], %s3867_s19, %s3867_s19, %s3868_s21  }
  0x3f   : > { %s3698_s24 = scalar_lea.hbm %s4822_s0, 2048 }
  0x40   : > { %p3699_p6 = scmp.ne.s32.totalorder %s4822_s0, %s3698_s24  ;;  %p3705_p5 = scmp.lt.u32.totalorder %s3698_s24, %s4822_s0 }
  0x42   : > { %p3701_p9 = pnand %p3699_p6, %p3986_p13 }
  0x44   : > { %p3702_p3 = pneg %p3701_p9 }
  0x46   : > { %p3707_p7 = pnand %p3705_p5, %p3702_p3 }
  0x48   : > { %3710 = shalt.err (!%p3707_p7)
}
  0x49   : > { %s3711_s15 = scalar_lea.vmem %s243_s20, 2048  ;;  %p3719_p1 = scmp.lt.s32.totalorder %s243_s20, %s243_s20 }
  0x4a   : > { %p3712_p10 = scmp.ne.s32.totalorder %s243_s20, %s3711_s15  ;;  %p3720_p2 = scmp.lt.s32.totalorder %s3711_s15, %s3711_s15 }
  0x4c   : > { %p3714_p12 = pnand %p3712_p10, %p3986_p13  ;;  %p3721_p4 = por %p3720_p2, %p3719_p1 }
  0x4e   : > { %p3715_p0 = pneg %p3714_p12 }
  0x50   : > { %p3722_p8 = pnand %p3721_p4, %p3715_p0 }
  0x52   : > { %3725 = shalt.err (!%p3722_p8)
}
  0x53   : > { %3558 = dma.hbm_to_vmem [thread:$0]  (!%p3970_p11), %s4822_s0, 2048, %s243_s20, [#allocation3], %s3867_s19, %s3867_s19, %s3868_s21  }
  0x54   : > { %s3869_s12 = smov [#allocation10]   ;;  %s3726_s25 = scalar_lea.hbm %s4828_s6, 6144 }
  0x55   : > { %s287_s22 = sshll.u32 %s3869_s12, 4  ;;  %p3727_p4 = scmp.ne.s32.totalorder %s4828_s6, %s3726_s25  ;;  %s288_s22 = int_to_ptr.vmem [resolvable:$true] %s287_s22 }
  0x56   : > { %p3733_p9 = scmp.lt.u32.totalorder %s3726_s25, %s4828_s6 }
  0x57   : > { %p3729_p8 = pnand %p3727_p4, %p3986_p13 }
  0x59   : > { %p3730_p6 = pneg %p3729_p8 }
  0x5b   : > { %p3735_p3 = pnand %p3733_p9, %p3730_p6 }
  0x5d   : > { %3738 = shalt.err (!%p3735_p3)
}
  0x5e   : > { %s3739_s20 = scalar_lea.vmem %s288_s22, 6144  ;;  %p3747_p12 = scmp.lt.s32.totalorder %s288_s22, %s288_s22 }
  0x5f   : > { %p3740_p5 = scmp.ne.s32.totalorder %s288_s22, %s3739_s20  ;;  %p3748_p0 = scmp.lt.s32.totalorder %s3739_s20, %s3739_s20 }
  0x61   : > { %p3742_p7 = pnand %p3740_p5, %p3986_p13  ;;  %p3749_p1 = por %p3748_p0, %p3747_p12 }
  0x63   : > { %p3743_p10 = pneg %p3742_p7 }
  0x65   : > { %p3750_p2 = pnand %p3749_p1, %p3743_p10 }
  0x67   : > { %3753 = shalt.err (!%p3750_p2)
}
  0x68   : > { %3567 = dma.hbm_to_vmem [thread:$0]  (!%p3970_p11), %s4828_s6, 6144, %s288_s22, [#allocation9], %s3867_s19, %s3867_s19, %s3868_s21  }
  0x69   : > { %s4080_s16 = sadd.s32 1, %s3862_s30   ;;  %s54_s26 = sadd.s32 1, %s3858_s29 }
  0x6a   : > { %s51_s12 = ssub.s32 %s3862_s30, %s4080_s16  ;;  %p61_p13 = scmp.ne.s32.totalorder %s3858_s29, %s3854_s28 }
  0x6b   : > { %p52_p4 = scmp.eq.s32.totalorder %s51_s12, 0  ;;  %p62_p8 = scmp.eq.s32.totalorder %s3862_s30, 0 }
  0x6c   : > { %p4843_p6 = scmp.eq.s32.totalorder %s3940_s9, 1  ;;  %p3580_p3 = scmp.lt.s32.totalorder %s3862_s30, 2 }
  0x6d   : > { %s4096_s24 = scalar_select %p52_p4, %s3858_s29, %s54_s26  }
  0x6e   : > { %p4090_p9 = por %p4843_p6, %p61_p13  ;;  %p63_p5 = por %p62_p8, %p61_p13 }
  0x6f   : > { %s304_s25 = sand.u32 1, %s3862_s30   ;;  %s306_s10 = sand.u32 1, %s3858_s29  }
  0x70   : > { %s2291_s22 = sshll.u32 %s306_s10, 7  ;;  %s2309_s14 = sshll.u32 %s3862_s30, 11 }
  0x71   : > { %s4104_s20 = scalar_lea.hbm %s4823_s1, %s2309_s14  ;;  %s308_s18 = scalar_lea.vmem [#allocation5], %s2291_s22 }
  0x72   : > { %s315_s27 = sshll.u32 %s308_s18, 4  ;;  %p4106_p11 = pnand %p3580_p3, %p63_p5  ;;  %s4110_s27 = int_to_ptr.vmem [resolvable:$true] %s315_s27 }
  0x73   : > { %s4112_s26 = scalar_lea.sflag [#allocation6], %s304_s25  ;;  %s3754_s10 = scalar_lea.hbm %s4104_s20, 2048 }
  0x74   : > { %p3755_p7 = scmp.ne.s32.totalorder %s4104_s20, %s3754_s10  ;;  %p3756_p10 = pneg %p4106_p11 }
  0x75   : > { %s3759_s17 = scalar_lea.hbm %s4823_s1, 4096  ;;  %p3760_p1 = scmp.lt.u32.totalorder %s4104_s20, %s4823_s1 }
  0x76   : > { %p3757_p12 = pnand %p3756_p10, %p3755_p7  ;;  %p3761_p2 = scmp.lt.u32.totalorder %s3759_s17, %s3754_s10 }
  0x77   : > { %p3763_p4 = scmp.lt.u32.totalorder %s3754_s10, %s4104_s20 }
  0x78   : > { %p3758_p0 = pneg %p3757_p12  ;;  %p3762_p13 = por %p3761_p2, %p3760_p1 }
  0x7a   : > { %p3764_p8 = por %p3763_p4, %p3762_p13 }
  0x7c   : > { %p3765_p6 = pnand %p3764_p8, %p3758_p0 }
  0x7e   : > { %3768 = shalt.err (!%p3765_p6)
}
  0x7f   : > { %s3769_s25 = scalar_lea.vmem %s4110_s27, 2048  ;;  %s3870_s22 = smov [#allocation5]  }
  0x80   : > { %p3770_p3 = scmp.ne.s32.totalorder %s4110_s27, %s3769_s25  ;;  %s3774_s14 = sshll.u32 %s3870_s22, 4  ;;  %s3775_s14 = int_to_ptr.vmem [resolvable:$false] %s3774_s14 }
  0x81   : > { %s3776_s15 = scalar_lea.vmem %s3775_s14, 4096  ;;  %p3777_p12 = scmp.lt.s32.totalorder %s4110_s27, %s3775_s14 }
  0x82   : > { %p3772_p5 = pnand %p3770_p3, %p3756_p10  ;;  %p3778_p1 = scmp.lt.s32.totalorder %s3776_s15, %s3769_s25 }
  0x84   : > { %p3773_p7 = pneg %p3772_p5  ;;  %p3779_p2 = por %p3778_p1, %p3777_p12 }
  0x86   : > { %p3780_p13 = pnand %p3779_p2, %p3773_p7 }
  0x88   : > { %3783 = shalt.err (!%p3780_p13)
}
  0x89   : > { %3571 = dma.hbm_to_vmem [thread:$0]  (!%p4106_p11), %s4104_s20, 2048, %s4110_s27, %s4112_s26, %s3867_s19, %s3867_s19, %s3868_s21  }
  0x8a   : > { %p4846_p10 = scmp.ne.s32.totalorder %s4840_s13, 0 }
  0x8c   : > { %327 = sbr.rel (%p4846_p10) target bundleno = 1705 (0x6a9), region = 52 }
  0x93   : > { %p4847_p0 = scmp.eq.s32.totalorder %s3940_s9, 0 }
  0x95   : > { %3829 = dma.done.wait (%p4847_p0), [#allocation3], 2048   ;;  %p4848_p4 = pmov %p4847_p0 }
  0x96   : > { %s333_s12 = sand.u32 1, %s3940_s9   ;;  %s335_s10 = sand.u32 1, %s3854_s28  }
  0x97   : > { %3831 = vsyncadd (%p4848_p4), [#allocation3], 4294965248  ;;  %s4153_s17 = sshll.u32 %s335_s10, 7  ;;  %s334_s19 = scalar_lea.sflag [#allocation6], %s333_s12 }
  0x98   : > { %s4156_s21 = scalar_lea.vmem [#allocation5], %s4153_s17  ;;  %p4849_p11 = scmp.ne.s32.totalorder %s4837_s11, 0 }
  0x9a   : > { %3833 = dma.done.wait (%p4849_p11), %s334_s19, 2048  }
  0x9b   : > { %3835 = vsyncadd (%p4849_p11), %s334_s19, 4294965248  ;;  %p4850_p8 = pmov %p4847_p0 }
  0x9c   : > { %p4851_p6 = pmov %p4847_p0 }
  0x9d   : > { %3837 = dma.done.wait (%p4850_p8), [#allocation6], 6144  }
  0x9e   : > { %3839 = vsyncadd (%p4851_p6), [#allocation6], 4294961152  ;;  %p4852_p3 = pmov %p4847_p0 }
  0x9f   : > { %p4853_p5 = pmov %p4847_p0 }
  0xa0   : > { %3841 = dma.done.wait (%p4852_p3), [#allocation9], 12288  }
  0xa1   : > { %3843 = vsyncadd (%p4853_p5), [#allocation9], 4294955008  ;;  %v4171_v0 = vld [vmem:[%s4156_s21] sm:$0xff]  ;;  %v4174_v1 = vld [vmem:[%s4156_s21 + $0x8] sm:$0xff]  ;;  %s4738_s25 = scalar_lea.vmem [#allocation11], %s4153_s17  ;;  %s2310_s22 = sshll.u32 %s3940_s9, 11 }
  0xa2   : > { %v4177_v2 = vld [vmem:[%s4156_s21 + $0x10] sm:$0xff]  ;;  %v3167_v3 = vpack.c.bf16 %v4174_v1, %v4171_v0  ;;  %v4182_v4 = vld [vmem:[%s4156_s21 + $0x18] sm:$0xff]  ;;  %v4187_v6 = vld [vmem:[%s4156_s21 + $0x20] sm:$0xff]  ;;  %s2171_s14 = sshll.u32 %s4738_s25, 4  ;;  %s4772_s17 = scalar_lea.hbm %s4830_s8, %s2310_s22  ;;  %s4774_s14 = int_to_ptr.vmem [resolvable:$true] %s2171_s14 }
  0xa3   : > { %v3171_v5 = vpack.c.bf16 %v4182_v4, %v4177_v2  ;;  %v4190_v7 = vld [vmem:[%s4156_s21 + $0x28] sm:$0xff]  ;;  %v4194_v9 = vld [vmem:[#allocation2] sm:$0xff]  ;;  %v4197_v10 = vld [vmem:[%s4156_s21 + $0x30] sm:$0xff]  ;;  %s4780_s9 = scalar_lea.sflag [#allocation4], %s335_s10  ;;  %s3784_s19 = scalar_lea.vmem %s4774_s14, 2048 }
  0xa4   : > { %3168 = vmatprep.subr.bf16.mxu0 %v3167_v3  ;;  %v3175_v8 = vpack.c.bf16 %v4190_v7, %v4187_v6  ;;  %v4200_v11 = vld [vmem:[%s4156_s21 + $0x38] sm:$0xff]  ;;  %2807 = vmatprep.mubr.f32.mxu0 %v4194_v9  ;;  %v4207_v13 = vld [vmem:[%s4156_s21 + $0x40] sm:$0xff]  ;;  %v4210_v14 = vld [vmem:[%s4156_s21 + $0x48] sm:$0xff]  ;;  %p3785_p7 = scmp.ne.s32.totalorder %s4774_s14, %s3784_s19 }
  0xa5   : > { %3170 = vmatpush3.bf16.msra.mxu0 %v3167_v3  ;;  %2863 = vmatprep.mubr.f32.mxu1 %v4194_v9  ;;  %v3179_v12 = vpack.c.bf16 %v4200_v11, %v4197_v10  ;;  %v3183_v15 = vpack.c.bf16 %v4210_v14, %v4207_v13  ;;  %v4215_v16 = vld [vmem:[%s4156_s21 + $0x50] sm:$0xff]  ;;  %v4218_v17 = vld [vmem:[%s4156_s21 + $0x58] sm:$0xff]  ;;  %v4223_v19 = vld [vmem:[%s4156_s21 + $0x60] sm:$0xff] }
  0xa6   : > { %3172 = vmatprep.subr.bf16.mxu0 %v3171_v5  ;;  %v3187_v18 = vpack.c.bf16 %v4218_v17, %v4215_v16  ;;  %v4226_v20 = vld [vmem:[%s4156_s21 + $0x68] sm:$0xff]  ;;  %v4231_v22 = vld [vmem:[%s4156_s21 + $0x70] sm:$0xff]  ;;  %v4234_v23 = vld [vmem:[%s4156_s21 + $0x78] sm:$0xff]  ;;  %p3786_p12 = pnand %p3785_p7, %p4090_p9  ;;  %s3871_s21 = smov [#allocation11]  }
  0xa7   : > { %v3191_v21 = vpack.c.bf16 %v4226_v20, %v4223_v19  ;;  %v3195_v24 = vpack.c.bf16 %v4234_v23, %v4231_v22  ;;  %v800_v25 = vld [vmem:[#allocation10 + $0x80] sm:$0xff]  ;;  %v801_v26 = vld [vmem:[#allocation10 + $0x88] sm:$0xff]  ;;  %v802_v30 = vld [vmem:[#allocation10 + $0x90] sm:$0xff]  ;;  %s3788_s11 = sshll.u32 %s3871_s21, 4  ;;  %s3789_s11 = int_to_ptr.vmem [resolvable:$false] %s3788_s11 }
  0xa8   : > { %v3231_v27 = vpack.c.bf16 %v801_v26, %v800_v25  ;;  %v784_v28 = vld [vmem:[#allocation10] sm:$0xff]  ;;  %v785_v29 = vld [vmem:[#allocation10 + $0x8] sm:$0xff]  ;;  %v803_v31 = vld [vmem:[#allocation10 + $0x98] sm:$0xff]  ;;  %p3787_p1 = pneg %p3786_p12  ;;  %s3790_s13 = scalar_lea.vmem %s3789_s11, 4096 }
  0xa9   : > { %3174 = vmatpush3.bf16.msra.mxu0 %v3171_v5  ;;  %v4238_v32 = vld [vmem:[#allocation2 + $0x8] sm:$0xff]  ;;  %v3233_v33 = vpack.c.bf16 %v785_v29, %v784_v28  ;;  %v4240_v34 = vld [vmem:[#allocation2 + $0x10] sm:$0xff]  ;;  %v3235_v35 = vpack.c.bf16 %v803_v31, %v802_v30  ;;  %v787_v37 = vld [vmem:[#allocation10 + $0x18] sm:$0xff]  ;;  %p3791_p2 = scmp.lt.s32.totalorder %s4774_s14, %s3789_s11  ;;  %p3792_p13 = scmp.lt.s32.totalorder %s3790_s13, %s3784_s19 }
  0xaa   : > { %3176 = vmatprep.subr.bf16.mxu0 %v3175_v8  ;;  %v786_v36 = vld [vmem:[#allocation10 + $0x10] sm:$0xff]  ;;  %v804_v38 = vld [vmem:[#allocation10 + $0xa0] sm:$0xff]  ;;  %v805_v39 = vld [vmem:[#allocation10 + $0xa8] sm:$0xff] }
  0xab   : > { %v4244_v40 = vld [vmem:[#allocation2 + $0x18] sm:$0xff]  ;;  %v3237_v41 = vpack.c.bf16 %v787_v37, %v786_v36  ;;  %v4246_v42 = vld [vmem:[#allocation2 + $0x20] sm:$0xff]  ;;  %v3239_v43 = vpack.c.bf16 %v805_v39, %v804_v38  ;;  %v789_v45 = vld [vmem:[#allocation10 + $0x28] sm:$0xff]  ;;  %p3793_p10 = por %p3792_p13, %p3791_p2 }
  0xac   : > { %v788_v44 = vld [vmem:[#allocation10 + $0x20] sm:$0xff]  ;;  %v806_v46 = vld [vmem:[#allocation10 + $0xb0] sm:$0xff]  ;;  %v807_v47 = vld [vmem:[#allocation10 + $0xb8] sm:$0xff] }
  0xad   : > { %3178 = vmatpush3.bf16.msra.mxu0 %v3175_v8  ;;  %v4250_v48 = vld [vmem:[#allocation2 + $0x28] sm:$0xff]  ;;  %v3241_v49 = vpack.c.bf16 %v789_v45, %v788_v44  ;;  %v4252_v50 = vld [vmem:[#allocation2 + $0x30] sm:$0xff]  ;;  %v3243_v51 = vpack.c.bf16 %v807_v47, %v806_v46  ;;  %v791_v53 = vld [vmem:[#allocation10 + $0x38] sm:$0xff]  ;;  %p3794_p0 = pnand %p3793_p10, %p3787_p1 }
  0xae   : > { %3180 = vmatprep.subr.bf16.mxu0 %v3179_v12  ;;  %v790_v52 = vld [vmem:[#allocation10 + $0x30] sm:$0xff]  ;;  %v808_v54 = vld [vmem:[#allocation10 + $0xc0] sm:$0xff]  ;;  %v809_v55 = vld [vmem:[#allocation10 + $0xc8] sm:$0xff] }
  0xaf   : > { %v4256_v56 = vld [vmem:[#allocation2 + $0x38] sm:$0xff]  ;;  %v3245_v57 = vpack.c.bf16 %v791_v53, %v790_v52  ;;  %v4258_v58 = vld [vmem:[#allocation2 + $0x40] sm:$0xff]  ;;  %v3247_v59 = vpack.c.bf16 %v809_v55, %v808_v54  ;;  %v793_v61 = vld [vmem:[#allocation10 + $0x48] sm:$0xff] }
  0xb0   : > { %v792_v60 = vld [vmem:[#allocation10 + $0x40] sm:$0xff]  ;;  %v810_v62 = vld [vmem:[#allocation10 + $0xd0] sm:$0xff]  ;;  %v811_v63 = vld [vmem:[#allocation10 + $0xd8] sm:$0xff] }
  0xb1   : > { %3182 = vmatpush3.bf16.msra.mxu0 %v3179_v12  ;;  %v4262_v3 = vld [vmem:[#allocation2 + $0x48] sm:$0xff]  ;;  %v3249_v5 = vpack.c.bf16 %v793_v61, %v792_v60  ;;  %v4264_v8 = vld [vmem:[#allocation2 + $0x50] sm:$0xff]  ;;  %v3251_v12 = vpack.c.bf16 %v811_v63, %v810_v62  ;;  %v4268_v25 = vld [vmem:[#allocation2 + $0x58] sm:$0xff] }
  0xb2   : > { %3184 = vmatprep.subr.bf16.mxu0 %v3183_v15  ;;  %v796_v29 = vld [vmem:[#allocation10 + $0x60] sm:$0xff]  ;;  %v797_v30 = vld [vmem:[#allocation10 + $0x68] sm:$0xff]  ;;  %v814_v31 = vld [vmem:[#allocation10 + $0xf0] sm:$0xff] }
  0xb3   : > { %v3257_v36 = vpack.c.bf16 %v797_v30, %v796_v29  ;;  %v4276_v37 = vld [vmem:[#allocation2 + $0x70] sm:$0xff]  ;;  %v4280_v39 = vld [vmem:[#allocation2 + $0x78] sm:$0xff]  ;;  %v768_v45 = vld [vmem:[#allocation7 + $0x100] sm:$0xff] }
  0xb4   : > { %v769_v46 = vld [vmem:[#allocation7 + $0x108] sm:$0xff] }
  0xb5   : > { %3186 = vmatpush3.bf16.msra.mxu0 %v3183_v15  ;;  %v794_v15 = vld [vmem:[#allocation10 + $0x50] sm:$0xff]  ;;  %v3327_v47 = vpack.c.bf16 %v769_v46, %v768_v45  ;;  %v780_v46 = vld [vmem:[#allocation7 + $0x160] sm:$0xff] }
  0xb6   : > { %3188 = vmatprep.subr.bf16.mxu0 %v3187_v18 }
  0xb9   : > { %3190 = vmatpush3.bf16.msra.mxu0 %v3187_v18  ;;  %v795_v18 = vld [vmem:[#allocation10 + $0x58] sm:$0xff] }
  0xba   : > { %3192 = vmatprep.subr.bf16.mxu0 %v3191_v21  ;;  %v3253_v26 = vpack.c.bf16 %v795_v18, %v794_v15 }
  0xbd   : > { %3194 = vmatpush3.bf16.msra.mxu0 %v3191_v21  ;;  %v812_v21 = vld [vmem:[#allocation10 + $0xe0] sm:$0xff] }
  0xbe   : > { %3196 = vmatprep.subr.bf16.mxu0 %v3195_v24 }
  0xc1   : > { %3198 = vmatpush3.bf16.msra.mxu0 %v3195_v24  ;;  %v813_v24 = vld [vmem:[#allocation10 + $0xe8] sm:$0xff] }
  0xc2   : > { %3232 = vmatprep.subr.bf16.mxu0 %v3231_v27  ;;  %v4270_v27 = vld [vmem:[#allocation2 + $0x60] sm:$0xff]  ;;  %v3255_v28 = vpack.c.bf16 %v813_v24, %v812_v21 }
  0xc4   : > { %2808 = vmatmul.mubr.f32.vlgmr.msra.gmra.mrb[0].mxu0 %v4238_v32 }
  0xc5   : > { %2810 = vmatprep.mubr.f32.mxu0 %v4240_v34  ;;  %3234 = vmatpush3.bf16.msra.mxu0 %v3233_v33  ;;  %v815_v33 = vld [vmem:[#allocation10 + $0xf8] sm:$0xff] }
  0xc6   : > { %3236 = vmatprep.subr.bf16.mxu0 %v3235_v35  ;;  %v4274_v35 = vld [vmem:[#allocation2 + $0x68] sm:$0xff]  ;;  %v3259_v38 = vpack.c.bf16 %v815_v33, %v814_v31 }
  0xc8   : > { %2811 = vmatmul.mubr.f32.gmra.mrb[2].mxu0 %v4244_v40 }
  0xc9   : > { %2813 = vmatprep.mubr.f32.mxu0 %v4246_v42  ;;  %3238 = vmatpush3.bf16.msra.mxu0 %v3237_v41  ;;  %v798_v41 = vld [vmem:[#allocation10 + $0x70] sm:$0xff] }
  0xca   : > { %3240 = vmatprep.subr.bf16.mxu0 %v3239_v43  ;;  %v799_v43 = vld [vmem:[#allocation10 + $0x78] sm:$0xff] }
  0xcb   : > { %v3261_v44 = vpack.c.bf16 %v799_v43, %v798_v41 }
  0xcc   : > { %2814 = vmatmul.mubr.f32.gmra.mrb[4].mxu0 %v4250_v48 }
  0xcd   : > { %2816 = vmatprep.mubr.f32.mxu0 %v4252_v50  ;;  %3242 = vmatpush3.bf16.msra.mxu0 %v3241_v49  ;;  %v770_v49 = vld [vmem:[#allocation7 + $0x110] sm:$0xff] }
  0xce   : > { %3244 = vmatprep.subr.bf16.mxu0 %v3243_v51  ;;  %v771_v51 = vld [vmem:[#allocation7 + $0x118] sm:$0xff] }
  0xcf   : > { %v3331_v55 = vpack.c.bf16 %v771_v51, %v770_v49 }
  0xd0   : > { %2817 = vmatmul.mubr.f32.gmra.mrb[6].mxu0 %v4256_v56 }
  0xd1   : > { %2819 = vmatprep.mubr.f32.mxu0 %v4258_v58  ;;  %3246 = vmatpush3.bf16.msra.mxu0 %v3245_v57  ;;  %v772_v57 = vld [vmem:[#allocation7 + $0x120] sm:$0xff] }
  0xd2   : > { %3248 = vmatprep.subr.bf16.mxu0 %v3247_v59  ;;  %v773_v59 = vld [vmem:[#allocation7 + $0x128] sm:$0xff] }
  0xd3   : > { %v3335_v63 = vpack.c.bf16 %v773_v59, %v772_v57 }
  0xd4   : > { %2820 = vmatmul.mubr.f32.gmra.mrb[8].mxu0 %v4262_v3 }
  0xd5   : > { %2822 = vmatprep.mubr.f32.mxu0 %v4264_v8  ;;  %3250 = vmatpush3.bf16.msra.mxu0 %v3249_v5  ;;  %v774_v5 = vld [vmem:[#allocation7 + $0x130] sm:$0xff] }
  0xd6   : > { %3252 = vmatprep.subr.bf16.mxu0 %v3251_v12  ;;  %v775_v12 = vld [vmem:[#allocation7 + $0x138] sm:$0xff] }
  0xd7   : > { %v3339_v24 = vpack.c.bf16 %v775_v12, %v774_v5  ;;  %v817_v5 = vld [vmem:[#allocation10 + $0x108] sm:$0xff] }
  0xd8   : > { %2823 = vmatmul.mubr.f32.gmra.mrb[10].mxu0 %v4268_v25 }
  0xd9   : > { %2825 = vmatprep.mubr.f32.mxu0 %v4270_v27  ;;  %3254 = vmatpush3.bf16.msra.mxu0 %v3253_v26  ;;  %v776_v26 = vld [vmem:[#allocation7 + $0x140] sm:$0xff] }
  0xda   : > { %3256 = vmatprep.subr.bf16.mxu0 %v3255_v28  ;;  %v777_v28 = vld [vmem:[#allocation7 + $0x148] sm:$0xff] }
  0xdb   : > { %v3343_v33 = vpack.c.bf16 %v777_v28, %v776_v26  ;;  %v818_v28 = vld [vmem:[#allocation10 + $0x110] sm:$0xff] }
  0xdc   : > { %2826 = vmatmul.mubr.f32.gmra.mrb[12].mxu0 %v4274_v35 }
  0xdd   : > { %2828 = vmatprep.mubr.f32.mxu0 %v4276_v37  ;;  %3258 = vmatpush3.bf16.msra.mxu0 %v3257_v36  ;;  %v778_v36 = vld [vmem:[#allocation7 + $0x150] sm:$0xff] }
  0xde   : > { %3260 = vmatprep.subr.bf16.mxu0 %v3259_v38  ;;  %v779_v38 = vld [vmem:[#allocation7 + $0x158] sm:$0xff] }
  0xdf   : > { %v3347_v45 = vpack.c.bf16 %v779_v38, %v778_v36  ;;  %v820_v36 = vld [vmem:[#allocation10 + $0x120] sm:$0xff]  ;;  %v821_v38 = vld [vmem:[#allocation10 + $0x128] sm:$0xff] }
  0xe0   : > { %2829 = vmatmul.mubr.f32.gmra.mrb[14].mxu0 %v4280_v39 }
  0xe1   : > { %3262 = vmatpush3.bf16.msra.mxu0 %v3261_v44 }
  0xe2   : > { %3328 = vmatprep.subr.bf16.mxu0 %v3327_v47 }
 0x197   : > { %v4283_v52 = vpop.f32.mrb[0].mxu0 }
 0x198   : > { %v4285_v53 = vpop.f32.mrb[1].mxu0 }
 0x199   : > { %903 = vmatprep.mubr.f32.mxu0 %v4285_v53  ;;  %v3199_v54 = vpack.c.bf16 %v4283_v52, %v4285_v53 }
 0x19a   : > { %904 = vmatmul.mubr.f32.vlgmr.msra.gmra.mrb[16].mxu0 %v4171_v0 }
 0x19b   : > { %v4291_v60 = vpop.f32.mrb[2].mxu0  ;;  %3200 = vmatprep.subr.bf16.mxu1 %v3199_v54  ;;  %908 = vmatprep.mubr.f32.mxu0 %v4283_v52 }
 0x19c   : > { %v4294_v61 = vpop.f32.mrb[3].mxu0  ;;  %3202 = vmatpush3.bf16.msra.mxu1 %v3199_v54  ;;  %3330 = vmatpush3.bf16.msra.mxu0 %v3327_v47  ;;  %v781_v47 = vld [vmem:[#allocation7 + $0x168] sm:$0xff] }
 0x19d   : > { %v3203_v62 = vpack.c.bf16 %v4291_v60, %v4294_v61  ;;  %3332 = vmatprep.subr.bf16.mxu0 %v3331_v55 }
 0x19e   : > { %909 = vmatmul.mubr.f32.gmra.mrb[18].mxu0 %v4174_v1 }
 0x19f   : > { %v4299_v15 = vpop.f32.mrb[4].mxu0  ;;  %3204 = vmatprep.subr.bf16.mxu1 %v3203_v62  ;;  %913 = vmatprep.mubr.f32.mxu0 %v4294_v61 }
 0x1a0   : > { %v4302_v18 = vpop.f32.mrb[5].mxu0  ;;  %3206 = vmatpush3.bf16.msra.mxu1 %v3203_v62  ;;  %3334 = vmatpush3.bf16.msra.mxu0 %v3331_v55  ;;  %v3351_v55 = vpack.c.bf16 %v781_v47, %v780_v46  ;;  %v823_v46 = vld [vmem:[#allocation10 + $0x138] sm:$0xff]  ;;  %v824_v47 = vld [vmem:[#allocation10 + $0x140] sm:$0xff] }
 0x1a1   : > { %v3207_v21 = vpack.c.bf16 %v4299_v15, %v4302_v18  ;;  %3336 = vmatprep.subr.bf16.mxu0 %v3335_v63 }
 0x1a2   : > { %914 = vmatmul.mubr.f32.gmra.mrb[20].mxu0 %v4177_v2 }
 0x1a3   : > { %v4307_v29 = vpop.f32.mrb[6].mxu0  ;;  %3208 = vmatprep.subr.bf16.mxu1 %v3207_v21  ;;  %918 = vmatprep.mubr.f32.mxu0 %v4291_v60 }
 0x1a4   : > { %v4310_v30 = vpop.f32.mrb[7].mxu0  ;;  %3210 = vmatpush3.bf16.msra.mxu1 %v3207_v21  ;;  %3338 = vmatpush3.bf16.msra.mxu0 %v3335_v63  ;;  %v816_v63 = vld [vmem:[#allocation10 + $0x100] sm:$0xff] }
 0x1a5   : > { %v3211_v31 = vpack.c.bf16 %v4307_v29, %v4310_v30  ;;  %3340 = vmatprep.subr.bf16.mxu0 %v3339_v24  ;;  %v3263_v26 = vpack.c.bf16 %v817_v5, %v816_v63  ;;  %v752_v63 = vld [vmem:[#allocation7 + $0x80] sm:$0xff] }
 0x1a6   : > { %919 = vmatmul.mubr.f32.gmra.mrb[22].mxu0 %v4182_v4 }
 0x1a7   : > { %v4315_v41 = vpop.f32.mrb[8].mxu0  ;;  %3212 = vmatprep.subr.bf16.mxu1 %v3211_v31  ;;  %923 = vmatprep.mubr.f32.mxu0 %v4302_v18 }
 0x1a8   : > { %v4318_v43 = vpop.f32.mrb[9].mxu0  ;;  %3214 = vmatpush3.bf16.msra.mxu1 %v3211_v31  ;;  %3342 = vmatpush3.bf16.msra.mxu0 %v3339_v24  ;;  %v819_v31 = vld [vmem:[#allocation10 + $0x118] sm:$0xff] }
 0x1a9   : > { %v3215_v44 = vpack.c.bf16 %v4315_v41, %v4318_v43  ;;  %3344 = vmatprep.subr.bf16.mxu0 %v3343_v33 }
 0x1aa   : > { %924 = vmatmul.mubr.f32.gmra.mrb[24].mxu0 %v4187_v6 }
 0x1ab   : > { %v4323_v49 = vpop.f32.mrb[10].mxu0  ;;  %3216 = vmatprep.subr.bf16.mxu1 %v3215_v44  ;;  %928 = vmatprep.mubr.f32.mxu0 %v4299_v15 }
 0x1ac   : > { %v4326_v51 = vpop.f32.mrb[11].mxu0  ;;  %3218 = vmatpush3.bf16.msra.mxu1 %v3215_v44  ;;  %3346 = vmatpush3.bf16.msra.mxu0 %v3343_v33  ;;  %v3267_v33 = vpack.c.bf16 %v819_v31, %v818_v28  ;;  %v3271_v44 = vpack.c.bf16 %v821_v38, %v820_v36 }
 0x1ad   : > { %v3219_v54 = vpack.c.bf16 %v4323_v49, %v4326_v51  ;;  %3348 = vmatprep.subr.bf16.mxu0 %v3347_v45 }
 0x1ae   : > { %929 = vmatmul.mubr.f32.gmra.mrb[26].mxu0 %v4190_v7 }
 0x1af   : > { %v4331_v57 = vpop.f32.mrb[12].mxu0  ;;  %3220 = vmatprep.subr.bf16.mxu1 %v3219_v54  ;;  %933 = vmatprep.mubr.f32.mxu0 %v4310_v30 }
 0x1b0   : > { %v4334_v59 = vpop.f32.mrb[13].mxu0  ;;  %3222 = vmatpush3.bf16.msra.mxu1 %v3219_v54  ;;  %3350 = vmatpush3.bf16.msra.mxu0 %v3347_v45  ;;  %v822_v45 = vld [vmem:[#allocation10 + $0x130] sm:$0xff] }
 0x1b1   : > { %v3223_v62 = vpack.c.bf16 %v4331_v57, %v4334_v59  ;;  %3352 = vmatprep.subr.bf16.mxu0 %v3351_v55  ;;  %v826_v54 = vld [vmem:[#allocation10 + $0x150] sm:$0xff] }
 0x1b2   : > { %934 = vmatmul.mubr.f32.gmra.mrb[28].mxu0 %v4197_v10 }
 0x1b3   : > { %v4339_v12 = vpop.f32.mrb[14].mxu0  ;;  %3224 = vmatprep.subr.bf16.mxu1 %v3223_v62  ;;  %938 = vmatprep.mubr.f32.mxu0 %v4307_v29 }
 0x1b4   : > { %v4342_v21 = vpop.f32.mrb[15].mxu0  ;;  %3226 = vmatpush3.bf16.msra.mxu1 %v3223_v62  ;;  %3354 = vmatpush3.bf16.msra.mxu0 %v3351_v55  ;;  %v828_v55 = vld [vmem:[#allocation10 + $0x160] sm:$0xff] }
 0x1b5   : > { %v3227_v24 = vpack.c.bf16 %v4339_v12, %v4342_v21 }
 0x1b6   : > { %939 = vmatmul.mubr.f32.gmra.mrb[30].mxu0 %v4200_v11 }
 0x1b7   : > { %3228 = vmatprep.subr.bf16.mxu1 %v3227_v24  ;;  %943 = vmatprep.mubr.f32.mxu0 %v4318_v43 }
 0x1b8   : > { %3230 = vmatpush3.bf16.msra.mxu1 %v3227_v24 }
 0x1b9   : > { %3264 = vmatprep.subr.bf16.mxu1 %v3263_v26 }
 0x1ba   : > { %944 = vmatmul.mubr.f32.gmra.mrb[32].mxu0 %v4207_v13 }
 0x1bb   : > { %2864 = vmatmul.mubr.f32.vlgmr.msra.gmra.mrb[0].mxu1 %v4238_v32  ;;  %948 = vmatprep.mubr.f32.mxu0 %v4315_v41  ;;  %v3275_v32 = vpack.c.bf16 %v823_v46, %v822_v45 }
 0x1bc   : > { %2866 = vmatprep.mubr.f32.mxu1 %v4240_v34  ;;  %3266 = vmatpush3.bf16.msra.mxu1 %v3263_v26  ;;  %v825_v34 = vld [vmem:[#allocation10 + $0x148] sm:$0xff] }
 0x1bd   : > { %3268 = vmatprep.subr.bf16.mxu1 %v3267_v33 }
 0x1be   : > { %949 = vmatmul.mubr.f32.gmra.mrb[34].mxu0 %v4210_v14 }
 0x1bf   : > { %2867 = vmatmul.mubr.f32.gmra.mrb[2].mxu1 %v4244_v40  ;;  %953 = vmatprep.mubr.f32.mxu0 %v4326_v51  ;;  %v3279_v40 = vpack.c.bf16 %v825_v34, %v824_v47 }
 0x1c0   : > { %2869 = vmatprep.mubr.f32.mxu1 %v4246_v42  ;;  %3270 = vmatpush3.bf16.msra.mxu1 %v3267_v33  ;;  %v827_v42 = vld [vmem:[#allocation10 + $0x158] sm:$0xff] }
 0x1c1   : > { %3272 = vmatprep.subr.bf16.mxu1 %v3271_v44 }
 0x1c2   : > { %954 = vmatmul.mubr.f32.gmra.mrb[36].mxu0 %v4215_v16 }
 0x1c3   : > { %2870 = vmatmul.mubr.f32.gmra.mrb[4].mxu1 %v4250_v48  ;;  %958 = vmatprep.mubr.f32.mxu0 %v4323_v49  ;;  %v3283_v48 = vpack.c.bf16 %v827_v42, %v826_v54 }
 0x1c4   : > { %2872 = vmatprep.mubr.f32.mxu1 %v4252_v50  ;;  %3274 = vmatpush3.bf16.msra.mxu1 %v3271_v44  ;;  %v829_v50 = vld [vmem:[#allocation10 + $0x168] sm:$0xff] }
 0x1c5   : > { %3276 = vmatprep.subr.bf16.mxu1 %v3275_v32 }
 0x1c6   : > { %959 = vmatmul.mubr.f32.gmra.mrb[38].mxu0 %v4218_v17 }
 0x1c7   : > { %2873 = vmatmul.mubr.f32.gmra.mrb[6].mxu1 %v4256_v56  ;;  %963 = vmatprep.mubr.f32.mxu0 %v4334_v59  ;;  %v3287_v56 = vpack.c.bf16 %v829_v50, %v828_v55 }
 0x1c8   : > { %2875 = vmatprep.mubr.f32.mxu1 %v4258_v58  ;;  %3278 = vmatpush3.bf16.msra.mxu1 %v3275_v32  ;;  %v830_v58 = vld [vmem:[#allocation10 + $0x170] sm:$0xff] }
 0x1c9   : > { %3280 = vmatprep.subr.bf16.mxu1 %v3279_v40 }
 0x1ca   : > { %964 = vmatmul.mubr.f32.gmra.mrb[40].mxu0 %v4223_v19 }
 0x1cb   : > { %2876 = vmatmul.mubr.f32.gmra.mrb[8].mxu1 %v4262_v3  ;;  %968 = vmatprep.mubr.f32.mxu0 %v4331_v57  ;;  %v831_v3 = vld [vmem:[#allocation10 + $0x178] sm:$0xff] }
 0x1cc   : > { %2878 = vmatprep.mubr.f32.mxu1 %v4264_v8  ;;  %3282 = vmatpush3.bf16.msra.mxu1 %v3279_v40  ;;  %v782_v8 = vld [vmem:[#allocation7 + $0x170] sm:$0xff] }
 0x1cd   : > { %3284 = vmatprep.subr.bf16.mxu1 %v3283_v48 }
 0x1ce   : > { %969 = vmatmul.mubr.f32.gmra.mrb[42].mxu0 %v4226_v20 }
 0x1cf   : > { %2879 = vmatmul.mubr.f32.gmra.mrb[10].mxu1 %v4268_v25  ;;  %973 = vmatprep.mubr.f32.mxu0 %v4342_v21  ;;  %v3291_v25 = vpack.c.bf16 %v831_v3, %v830_v58 }
 0x1d0   : > { %2881 = vmatprep.mubr.f32.mxu1 %v4270_v27  ;;  %3286 = vmatpush3.bf16.msra.mxu1 %v3283_v48  ;;  %v783_v27 = vld [vmem:[#allocation7 + $0x178] sm:$0xff] }
 0x1d1   : > { %3288 = vmatprep.subr.bf16.mxu1 %v3287_v56  ;;  %v3355_v62 = vpack.c.bf16 %v783_v27, %v782_v8 }
 0x1d2   : > { %974 = vmatmul.mubr.f32.gmra.mrb[44].mxu0 %v4231_v22 }
 0x1d3   : > { %2882 = vmatmul.mubr.f32.gmra.mrb[12].mxu1 %v4274_v35  ;;  %978 = vmatprep.mubr.f32.mxu0 %v4339_v12  ;;  %v753_v35 = vld [vmem:[#allocation7 + $0x88] sm:$0xff] }
 0x1d4   : > { %2884 = vmatprep.mubr.f32.mxu1 %v4276_v37  ;;  %3290 = vmatpush3.bf16.msra.mxu1 %v3287_v56  ;;  %v3295_v5 = vpack.c.bf16 %v753_v35, %v752_v63  ;;  %v736_v35 = vld [vmem:[#allocation7] sm:$0xff] }
 0x1d5   : > { %3292 = vmatprep.subr.bf16.mxu1 %v3291_v25  ;;  %3356 = vmatprep.subr.bf16.mxu0 %v3355_v62 }
 0x1d6   : > { %979 = vmatmul.mubr.f32.gmra.mrb[46].mxu0 %v4234_v23 }
 0x1d7   : > { %2885 = vmatmul.mubr.f32.gmra.mrb[14].mxu1 %v4280_v39  ;;  %3358 = vmatpush3.bf16.msra.mxu0 %v3355_v62 }
 0x1d8   : > { %3294 = vmatpush3.bf16.msra.mxu1 %v3291_v25 }
 0x1d9   : > { %3296 = vmatprep.subr.bf16.mxu1 %v3295_v5  ;;  %v737_v5 = vld [vmem:[#allocation7 + $0x8] sm:$0xff] }
 0x26d   : > { %v2407_v37 = vpop.f32.mrb[16].mxu0 }
 0x26e   : > { %v2408_v24 = vpop.f32.mrb[17].mxu0 }
 0x26f   : > { %v4378_v26 = vadd.f32 %v2408_v24, %v2407_v37 }
 0x271   : > { %v2410_v28 = vpop.f32.mrb[18].mxu0 }
 0x272   : > { %v2411_v39 = vpop.f32.mrb[19].mxu0 }
 0x273   : > { %v4380_v31 = vadd.f32 %v2411_v39, %v2410_v28  ;;  %v754_v28 = vld [vmem:[#allocation7 + $0x90] sm:$0xff]  ;;  %v755_v39 = vld [vmem:[#allocation7 + $0x98] sm:$0xff] }
 0x275   : > { %v2413_v33 = vpop.f32.mrb[20].mxu0 }
 0x276   : > { %v2414_v36 = vpop.f32.mrb[21].mxu0 }
 0x277   : > { %v4382_v38 = vadd.f32 %v2414_v36, %v2413_v33 }
 0x279   : > { %v2416_v44 = vpop.f32.mrb[22].mxu0 }
 0x27a   : > { %v2417_v45 = vpop.f32.mrb[23].mxu0 }
 0x27b   : > { %v4384_v46 = vadd.f32 %v2417_v45, %v2416_v44  ;;  %v3297_v45 = vpack.c.bf16 %v737_v5, %v736_v35 }
 0x27d   : > { %v2419_v32 = vpop.f32.mrb[24].mxu0 }
 0x27e   : > { %v2420_v47 = vpop.f32.mrb[25].mxu0 }
 0x27f   : > { %v4386_v34 = vadd.f32 %v2420_v47, %v2419_v32 }
 0x281   : > { %v2422_v40 = vpop.f32.mrb[26].mxu0 }
 0x282   : > { %v2423_v54 = vpop.f32.mrb[27].mxu0 }
 0x283   : > { %v4388_v42 = vadd.f32 %v2423_v54, %v2422_v40 }
 0x285   : > { %v2425_v48 = vpop.f32.mrb[28].mxu0 }
 0x286   : > { %v2426_v55 = vpop.f32.mrb[29].mxu0 }
 0x287   : > { %v4390_v50 = vadd.f32 %v2426_v55, %v2425_v48  ;;  %v3299_v48 = vpack.c.bf16 %v755_v39, %v754_v28  ;;  %v738_v55 = vld [vmem:[#allocation7 + $0x10] sm:$0xff] }
 0x289   : > { %v2428_v56 = vpop.f32.mrb[30].mxu0 }
 0x28a   : > { %v2429_v58 = vpop.f32.mrb[31].mxu0 }
 0x28b   : > { %v4392_v3 = vadd.f32 %v2429_v58, %v2428_v56  ;;  %v739_v56 = vld [vmem:[#allocation7 + $0x18] sm:$0xff] }
 0x28d   : > { %v2431_v8 = vpop.f32.mrb[32].mxu0 }
 0x28e   : > { %v2865_v25 = vpop.f32.mrb[0].mxu1  ;;  %v2432_v27 = vpop.f32.mrb[33].mxu0 }
 0x28f   : > { %v705_v62 = vmul.f32 2.0, %v2865_v25  ;;  %v625_v63 = vpop.f32.mrb[1].mxu1  ;;  %v4394_v37 = vadd.f32 %v2432_v27, %v2431_v8  ;;  %v756_v25 = vld [vmem:[#allocation7 + $0xa0] sm:$0xff]  ;;  %v757_v27 = vld [vmem:[#allocation7 + $0xa8] sm:$0xff] }
 0x290   : > { %v704_v24 = vmul.f32 2.0, %v625_v63 }
 0x291   : > { %4854 = vst [vmem:[#allocation19_spill] sm:$0xff] %v4394_v37  ;;  %v2434_v33 = vpop.f32.mrb[34].mxu0  ;;  %v721_v47 = vsub.f32 %v705_v62, %v4174_v1  ;;  %v3301_v62 = vpack.c.bf16 %v739_v56, %v738_v55  ;;  %v759_v37 = vld [vmem:[#allocation7 + $0xb8] sm:$0xff] }
 0x292   : > { %v720_v36 = vsub.f32 %v704_v24, %v4171_v0  ;;  %v2868_v44 = vpop.f32.mrb[2].mxu1  ;;  %v2435_v32 = vpop.f32.mrb[35].mxu0 }
 0x293   : > { %v707_v40 = vmul.f32 2.0, %v2868_v44  ;;  %v635_v54 = vpop.f32.mrb[3].mxu1  ;;  %v4398_v58 = vadd.f32 %v2435_v32, %v2434_v33  ;;  %v3303_v33 = vpack.c.bf16 %v757_v27, %v756_v25  ;;  %v740_v32 = vld [vmem:[#allocation7 + $0x20] sm:$0xff] }
 0x294   : > { %v706_v8 = vmul.f32 2.0, %v635_v54  ;;  %2919 = vmatprep.mubr.f32.mxu1 %v720_v36  ;;  %2975 = vmatprep.mubr.f32.mxu0 %v720_v36  ;;  %v741_v54 = vld [vmem:[#allocation7 + $0x28] sm:$0xff] }
 0x295   : > { %4855 = vst [vmem:[#allocation20_spill] sm:$0xff] %v4398_v58  ;;  %2920 = vmatmul.mubr.f32.vlgmr.msra.gmra.mrb[16].mxu1 %v721_v47  ;;  %2976 = vmatmul.mubr.f32.vlgmr.msra.gmra.mrb[48].mxu0 %v721_v47  ;;  %v2437_v63 = vpop.f32.mrb[36].mxu0  ;;  %v723_v28 = vsub.f32 %v707_v40, %v4182_v4  ;;  %v758_v47 = vld [vmem:[#allocation7 + $0xb0] sm:$0xff]  ;;  %v3305_v40 = vpack.c.bf16 %v741_v54, %v740_v32 }
 0x296   : > { %v722_v35 = vsub.f32 %v706_v8, %v4177_v2  ;;  %v2871_v5 = vpop.f32.mrb[4].mxu1  ;;  %3298 = vmatpush3.bf16.msra.mxu1 %v3297_v45  ;;  %v2438_v24 = vpop.f32.mrb[37].mxu0 }
 0x297   : > { %v709_v39 = vmul.f32 2.0, %v2871_v5  ;;  %v645_v44 = vpop.f32.mrb[5].mxu1  ;;  %3300 = vmatprep.subr.bf16.mxu1 %v3299_v48  ;;  %v4402_v36 = vadd.f32 %v2438_v24, %v2437_v63  ;;  %v3307_v63 = vpack.c.bf16 %v759_v37, %v758_v47  ;;  %v742_v5 = vld [vmem:[#allocation7 + $0x30] sm:$0xff]  ;;  %v743_v24 = vld [vmem:[#allocation7 + $0x38] sm:$0xff] }
 0x298   : > { %v708_v58 = vmul.f32 2.0, %v645_v44  ;;  %2922 = vmatprep.mubr.f32.mxu1 %v722_v35  ;;  %2978 = vmatprep.mubr.f32.mxu0 %v722_v35 }
 0x299   : > { %4856 = vst [vmem:[#allocation21_spill] sm:$0xff] %v4402_v36  ;;  %2923 = vmatmul.mubr.f32.gmra.mrb[18].mxu1 %v723_v28  ;;  %2979 = vmatmul.mubr.f32.gmra.mrb[50].mxu0 %v723_v28  ;;  %v2440_v45 = vpop.f32.mrb[38].mxu0  ;;  %v725_v48 = vsub.f32 %v709_v39, %v4190_v7  ;;  %v760_v28 = vld [vmem:[#allocation7 + $0xc0] sm:$0xff]  ;;  %v761_v36 = vld [vmem:[#allocation7 + $0xc8] sm:$0xff]  ;;  %v3309_v39 = vpack.c.bf16 %v743_v24, %v742_v5 }
 0x29a   : > { %v724_v55 = vsub.f32 %v708_v58, %v4187_v6  ;;  %v2874_v56 = vpop.f32.mrb[6].mxu1  ;;  %3302 = vmatpush3.bf16.msra.mxu1 %v3301_v62  ;;  %v2441_v8 = vpop.f32.mrb[39].mxu0 }
 0x29b   : > { %v711_v25 = vmul.f32 2.0, %v2874_v56  ;;  %v655_v27 = vpop.f32.mrb[7].mxu1  ;;  %3304 = vmatprep.subr.bf16.mxu1 %v3303_v33  ;;  %v4406_v35 = vadd.f32 %v2441_v8, %v2440_v45  ;;  %v3311_v45 = vpack.c.bf16 %v761_v36, %v760_v28  ;;  %v744_v56 = vld [vmem:[#allocation7 + $0x40] sm:$0xff]  ;;  %v745_v8 = vld [vmem:[#allocation7 + $0x48] sm:$0xff] }
 0x29c   : > { %v710_v44 = vmul.f32 2.0, %v655_v27  ;;  %2925 = vmatprep.mubr.f32.mxu1 %v724_v55  ;;  %2981 = vmatprep.mubr.f32.mxu0 %v724_v55 }
 0x29d   : > { %4857 = vst [vmem:[#allocation22_spill] sm:$0xff] %v4406_v35  ;;  %2926 = vmatmul.mubr.f32.gmra.mrb[20].mxu1 %v725_v48  ;;  %2982 = vmatmul.mubr.f32.gmra.mrb[52].mxu0 %v725_v48  ;;  %v2443_v58 = vpop.f32.mrb[40].mxu0  ;;  %v727_v37 = vsub.f32 %v711_v25, %v4200_v11  ;;  %v762_v48 = vld [vmem:[#allocation7 + $0xd0] sm:$0xff]  ;;  %v763_v35 = vld [vmem:[#allocation7 + $0xd8] sm:$0xff]  ;;  %v3313_v25 = vpack.c.bf16 %v745_v8, %v744_v56 }
 0x29e   : > { %v726_v62 = vsub.f32 %v710_v44, %v4197_v10  ;;  %v2877_v32 = vpop.f32.mrb[8].mxu1  ;;  %3306 = vmatpush3.bf16.msra.mxu1 %v3305_v40  ;;  %v2444_v54 = vpop.f32.mrb[41].mxu0 }
 0x29f   : > { %v713_v33 = vmul.f32 2.0, %v2877_v32  ;;  %v665_v47 = vpop.f32.mrb[9].mxu1  ;;  %3308 = vmatprep.subr.bf16.mxu1 %v3307_v63  ;;  %v4410_v55 = vadd.f32 %v2444_v54, %v2443_v58  ;;  %v3315_v58 = vpack.c.bf16 %v763_v35, %v762_v48  ;;  %v746_v32 = vld [vmem:[#allocation7 + $0x50] sm:$0xff]  ;;  %v747_v54 = vld [vmem:[#allocation7 + $0x58] sm:$0xff] }
 0x2a0   : > { %v712_v27 = vmul.f32 2.0, %v665_v47  ;;  %2928 = vmatprep.mubr.f32.mxu1 %v726_v62  ;;  %2984 = vmatprep.mubr.f32.mxu0 %v726_v62 }
 0x2a1   : > { %4858 = vst [vmem:[#allocation23_spill] sm:$0xff] %v4410_v55  ;;  %2929 = vmatmul.mubr.f32.gmra.mrb[22].mxu1 %v727_v37  ;;  %2985 = vmatmul.mubr.f32.gmra.mrb[54].mxu0 %v727_v37  ;;  %v2446_v40 = vpop.f32.mrb[42].mxu0  ;;  %v729_v36 = vsub.f32 %v713_v33, %v4210_v14  ;;  %v764_v37 = vld [vmem:[#allocation7 + $0xe0] sm:$0xff]  ;;  %v765_v55 = vld [vmem:[#allocation7 + $0xe8] sm:$0xff]  ;;  %v3317_v33 = vpack.c.bf16 %v747_v54, %v746_v32 }
 0x2a2   : > { %v728_v5 = vsub.f32 %v712_v27, %v4207_v13  ;;  %v2880_v24 = vpop.f32.mrb[10].mxu1  ;;  %3310 = vmatpush3.bf16.msra.mxu1 %v3309_v39  ;;  %v2447_v44 = vpop.f32.mrb[43].mxu0 }
 0x2a3   : > { %v715_v63 = vmul.f32 2.0, %v2880_v24  ;;  %v675_v28 = vpop.f32.mrb[11].mxu1  ;;  %3312 = vmatprep.subr.bf16.mxu1 %v3311_v45  ;;  %v4414_v62 = vadd.f32 %v2447_v44, %v2446_v40  ;;  %v3319_v40 = vpack.c.bf16 %v765_v55, %v764_v37  ;;  %v748_v24 = vld [vmem:[#allocation7 + $0x60] sm:$0xff]  ;;  %v749_v44 = vld [vmem:[#allocation7 + $0x68] sm:$0xff] }
 0x2a4   : > { %v714_v47 = vmul.f32 2.0, %v675_v28  ;;  %2931 = vmatprep.mubr.f32.mxu1 %v728_v5  ;;  %2987 = vmatprep.mubr.f32.mxu0 %v728_v5 }
 0x2a5   : > { %4859 = vst [vmem:[#allocation24_spill] sm:$0xff] %v4414_v62  ;;  %2932 = vmatmul.mubr.f32.gmra.mrb[24].mxu1 %v729_v36  ;;  %2988 = vmatmul.mubr.f32.gmra.mrb[56].mxu0 %v729_v36  ;;  %v2449_v39 = vpop.f32.mrb[44].mxu0  ;;  %v731_v35 = vsub.f32 %v715_v63, %v4218_v17  ;;  %v766_v36 = vld [vmem:[#allocation7 + $0xf0] sm:$0xff]  ;;  %v767_v62 = vld [vmem:[#allocation7 + $0xf8] sm:$0xff]  ;;  %v3321_v63 = vpack.c.bf16 %v749_v44, %v748_v24 }
 0x2a6   : > { %v730_v56 = vsub.f32 %v714_v47, %v4215_v16  ;;  %v2883_v8 = vpop.f32.mrb[12].mxu1  ;;  %3314 = vmatpush3.bf16.msra.mxu1 %v3313_v25  ;;  %v2450_v27 = vpop.f32.mrb[45].mxu0 }
 0x2a7   : > { %v717_v45 = vmul.f32 2.0, %v2883_v8  ;;  %v685_v48 = vpop.f32.mrb[13].mxu1  ;;  %3316 = vmatprep.subr.bf16.mxu1 %v3315_v58  ;;  %v4418_v5 = vadd.f32 %v2450_v27, %v2449_v39  ;;  %v3323_v39 = vpack.c.bf16 %v767_v62, %v766_v36  ;;  %v750_v8 = vld [vmem:[#allocation7 + $0x70] sm:$0xff]  ;;  %v751_v27 = vld [vmem:[#allocation7 + $0x78] sm:$0xff] }
 0x2a8   : > { %v716_v28 = vmul.f32 2.0, %v685_v48  ;;  %2934 = vmatprep.mubr.f32.mxu1 %v730_v56  ;;  %2990 = vmatprep.mubr.f32.mxu0 %v730_v56 }
 0x2a9   : > { %2935 = vmatmul.mubr.f32.gmra.mrb[26].mxu1 %v731_v35  ;;  %2991 = vmatmul.mubr.f32.gmra.mrb[58].mxu0 %v731_v35  ;;  %v2452_v25 = vpop.f32.mrb[46].mxu0  ;;  %v733_v55 = vsub.f32 %v717_v45, %v4226_v20 }
 0x2aa   : > { %v732_v32 = vsub.f32 %v716_v28, %v4223_v19  ;;  %v2886_v54 = vpop.f32.mrb[14].mxu1  ;;  %3318 = vmatpush3.bf16.msra.mxu1 %v3317_v33  ;;  %v2453_v47 = vpop.f32.mrb[47].mxu0  ;;  %v3325_v33 = vpack.c.bf16 %v751_v27, %v750_v8 }
 0x2ab   : > { %v719_v58 = vmul.f32 2.0, %v2886_v54  ;;  %v695_v37 = vpop.f32.mrb[15].mxu1  ;;  %3320 = vmatprep.subr.bf16.mxu1 %v3319_v40  ;;  %v4422_v56 = vadd.f32 %v2453_v47, %v2452_v25 }
 0x2ac   : > { %v718_v48 = vmul.f32 2.0, %v695_v37  ;;  %2937 = vmatprep.mubr.f32.mxu1 %v732_v32  ;;  %2993 = vmatprep.mubr.f32.mxu0 %v732_v32 }
 0x2ad   : > { %2938 = vmatmul.mubr.f32.gmra.mrb[28].mxu1 %v733_v55  ;;  %2994 = vmatmul.mubr.f32.gmra.mrb[60].mxu0 %v733_v55  ;;  %v735_v24 = vsub.f32 %v719_v58, %v4234_v23 }
 0x2ae   : > { %v734_v35 = vsub.f32 %v718_v48, %v4231_v22  ;;  %3322 = vmatpush3.bf16.msra.mxu1 %v3321_v63 }
 0x2af   : > { %3324 = vmatprep.subr.bf16.mxu1 %v3323_v39 }
 0x2b0   : > { %2940 = vmatprep.mubr.f32.mxu1 %v734_v35  ;;  %2996 = vmatprep.mubr.f32.mxu0 %v734_v35 }
 0x2b1   : > { %2941 = vmatmul.mubr.f32.gmra.mrb[30].mxu1 %v735_v24  ;;  %2997 = vmatmul.mubr.f32.gmra.mrb[62].mxu0 %v735_v24 }
 0x2b2   : > { %3326 = vmatpush3.bf16.msra.mxu1 %v3325_v33  ;;  %1200 = vmatprep.mubr.f32.mxu1 %v4285_v53  ;;  %v4480_v53 = vld [vmem:[%s4825_s3] ss:$0 sm:$0xff] }
 0x2b3   : > { %3031 = vmatprep.mubr.f32.mxu0 %v4194_v9 }
 0x2b5   : > { %1201 = vmatmul.mubr.f32.vlgmr.msra.gmra.mrb[32].mxu1 %v4171_v0  ;;  %v3626_v0 = vld [vmem:[#allocation2] sm:$0xff] }
 0x2b6   : > { %1205 = vmatprep.mubr.f32.mxu1 %v4283_v52 }
 0x2b9   : > { %1206 = vmatmul.mubr.f32.gmra.mrb[34].mxu1 %v4174_v1 }
 0x2ba   : > { %1210 = vmatprep.mubr.f32.mxu1 %v4294_v61 }
 0x2bd   : > { %1211 = vmatmul.mubr.f32.gmra.mrb[36].mxu1 %v4177_v2 }
 0x2be   : > { %1215 = vmatprep.mubr.f32.mxu1 %v4291_v60 }
 0x2c1   : > { %1216 = vmatmul.mubr.f32.gmra.mrb[38].mxu1 %v4182_v4 }
 0x2c2   : > { %1220 = vmatprep.mubr.f32.mxu1 %v4302_v18 }
 0x2c5   : > { %1221 = vmatmul.mubr.f32.gmra.mrb[40].mxu1 %v4187_v6 }
 0x2c6   : > { %1225 = vmatprep.mubr.f32.mxu1 %v4299_v15 }
 0x2c9   : > { %1226 = vmatmul.mubr.f32.gmra.mrb[42].mxu1 %v4190_v7 }
 0x2ca   : > { %1230 = vmatprep.mubr.f32.mxu1 %v4310_v30 }
 0x2cd   : > { %1231 = vmatmul.mubr.f32.gmra.mrb[44].mxu1 %v4197_v10 }
 0x2ce   : > { %1235 = vmatprep.mubr.f32.mxu1 %v4307_v29 }
 0x2d1   : > { %1236 = vmatmul.mubr.f32.gmra.mrb[46].mxu1 %v4200_v11 }
 0x2d2   : > { %1240 = vmatprep.mubr.f32.mxu1 %v4318_v43 }
 0x2d5   : > { %1241 = vmatmul.mubr.f32.gmra.mrb[48].mxu1 %v4207_v13 }
 0x2d6   : > { %1245 = vmatprep.mubr.f32.mxu1 %v4315_v41 }
 0x2d9   : > { %1246 = vmatmul.mubr.f32.gmra.mrb[50].mxu1 %v4210_v14 }
 0x2da   : > { %1250 = vmatprep.mubr.f32.mxu1 %v4326_v51 }
 0x2dd   : > { %1251 = vmatmul.mubr.f32.gmra.mrb[52].mxu1 %v4215_v16 }
 0x2de   : > { %1255 = vmatprep.mubr.f32.mxu1 %v4323_v49 }
 0x2e1   : > { %1256 = vmatmul.mubr.f32.gmra.mrb[54].mxu1 %v4218_v17 }
 0x2e2   : > { %1260 = vmatprep.mubr.f32.mxu1 %v4334_v59 }
 0x2e5   : > { %1261 = vmatmul.mubr.f32.gmra.mrb[56].mxu1 %v4223_v19 }
 0x2e6   : > { %1265 = vmatprep.mubr.f32.mxu1 %v4331_v57 }
 0x2e9   : > { %1266 = vmatmul.mubr.f32.gmra.mrb[58].mxu1 %v4226_v20 }
 0x2ea   : > { %1270 = vmatprep.mubr.f32.mxu1 %v4342_v21 }
 0x2ed   : > { %1271 = vmatmul.mubr.f32.gmra.mrb[60].mxu1 %v4231_v22 }
 0x2ee   : > { %1275 = vmatprep.mubr.f32.mxu1 %v4339_v12 }
 0x2f1   : > { %1276 = vmatmul.mubr.f32.gmra.mrb[62].mxu1 %v4234_v23 }
 0x2f2   : > { %3087 = vmatprep.mubr.f32.mxu1 %v3626_v0 }
 0x368   : > { %v2977_v1 = vpop.f32.mrb[48].mxu0 }
 0x369   : > { %v1347_v2 = vpop.f32.mrb[49].mxu0 }
 0x36c   : > { %v2980_v4 = vpop.f32.mrb[50].mxu0 }
 0x36d   : > { %v1357_v6 = vpop.f32.mrb[51].mxu0 }
 0x370   : > { %v2983_v7 = vpop.f32.mrb[52].mxu0 }
 0x371   : > { %v1367_v9 = vpop.f32.mrb[53].mxu0 }
 0x374   : > { %v4459_v10 = vpop.f32.mrb[54].mxu0 }
 0x375   : > { %v1377_v11 = vpop.f32.mrb[55].mxu0 }
 0x378   : > { %v4461_v13 = vpop.f32.mrb[56].mxu0 }
 0x379   : > { %v4463_v14 = vpop.f32.mrb[57].mxu0 }
 0x37c   : > { %v4465_v16 = vpop.f32.mrb[58].mxu0 }
 0x37d   : > { %v4467_v17 = vpop.f32.mrb[59].mxu0 }
 0x380   : > { %v4469_v19 = vpop.f32.mrb[60].mxu0 }
 0x381   : > { %v4471_v20 = vpop.f32.mrb[61].mxu0 }
 0x384   : > { %v4473_v22 = vpop.f32.mrb[62].mxu0 }
 0x385   : > { %v4475_v23 = vpop.f32.mrb[63].mxu0 }
 0x388   : > { %v2519_v52 = vpop.f32.mrb[32].mxu1 }
 0x389   : > { %v2520_v60 = vpop.f32.mrb[33].mxu1 }
 0x38a   : > { %v2521_v61 = vadd.f32 %v2520_v60, %v2519_v52 }
 0x38c   : > { %v1203_v15 = vadd.f32 %v2521_v61, %v4480_v53  ;;  %v2522_v18 = vpop.f32.mrb[34].mxu1 }
 0x38d   : > { %v2523_v29 = vpop.f32.mrb[35].mxu1 }
 0x38e   : > { %v1348_v30 = vadd.f32 %v1347_v2, %v1203_v15  ;;  %v2524_v41 = vadd.f32 %v2523_v29, %v2522_v18 }
 0x390   : > { %v1208_v43 = vadd.f32 %v2524_v41, %v4480_v53  ;;  %v2525_v49 = vpop.f32.mrb[36].mxu1  ;;  %v4484_v12 = vmax.f32 %v1348_v30, 0.0 }
 0x391   : > { %v2526_v51 = vpop.f32.mrb[37].mxu1 }
 0x392   : > { %v1353_v57 = vadd.f32 %v2977_v1, %v1208_v43  ;;  %v2527_v59 = vadd.f32 %v2526_v51, %v2525_v49 }
 0x394   : > { %v4486_v21 = vmax.f32 %v1353_v57, 0.0  ;;  %v1213_v62 = vadd.f32 %v2527_v59, %v4480_v53  ;;  %v2528_v45 = vpop.f32.mrb[38].mxu1 }
 0x395   : > { %v2529_v40 = vpop.f32.mrb[39].mxu1 }
 0x396   : > { %v1358_v44 = vadd.f32 %v1357_v6, %v1213_v62  ;;  %v2530_v28 = vadd.f32 %v2529_v40, %v2528_v45  ;;  %v3359_v36 = vpack.c.bf16 %v4486_v21, %v4484_v12 }
 0x398   : > { %v1218_v25 = vadd.f32 %v2530_v28, %v4480_v53  ;;  %v2531_v32 = vpop.f32.mrb[40].mxu1  ;;  %3360 = vmatprep.subr.bf16.mxu0 %v3359_v36  ;;  %v4492_v55 = vmax.f32 %v1358_v44, 0.0 }
 0x399   : > { %v2532_v54 = vpop.f32.mrb[41].mxu1  ;;  %3362 = vmatpush3.bf16.msra.mxu0 %v3359_v36 }
 0x39a   : > { %v1363_v63 = vadd.f32 %v2980_v4, %v1218_v25  ;;  %v2533_v47 = vadd.f32 %v2532_v54, %v2531_v32 }
 0x39c   : > { %v4494_v58 = vmax.f32 %v1363_v63, 0.0  ;;  %v1223_v37 = vadd.f32 %v2533_v47, %v4480_v53  ;;  %v2534_v39 = vpop.f32.mrb[42].mxu1 }
 0x39d   : > { %v2535_v8 = vpop.f32.mrb[43].mxu1 }
 0x39e   : > { %v1368_v27 = vadd.f32 %v1367_v9, %v1223_v37  ;;  %v2536_v48 = vadd.f32 %v2535_v8, %v2534_v39  ;;  %v3363_v35 = vpack.c.bf16 %v4494_v58, %v4492_v55 }
 0x3a0   : > { %v1228_v33 = vadd.f32 %v2536_v48, %v4480_v53  ;;  %v2537_v24 = vpop.f32.mrb[44].mxu1  ;;  %3364 = vmatprep.subr.bf16.mxu0 %v3363_v35  ;;  %v4500_v4 = vmax.f32 %v1368_v27, 0.0 }
 0x3a1   : > { %v2538_v0 = vpop.f32.mrb[45].mxu1  ;;  %3366 = vmatpush3.bf16.msra.mxu0 %v3363_v35 }
 0x3a2   : > { %v1373_v1 = vadd.f32 %v2983_v7, %v1228_v33  ;;  %v2539_v2 = vadd.f32 %v2538_v0, %v2537_v24 }
 0x3a4   : > { %v4502_v6 = vmax.f32 %v1373_v1, 0.0  ;;  %v1233_v52 = vadd.f32 %v2539_v2, %v4480_v53  ;;  %v2540_v60 = vpop.f32.mrb[46].mxu1 }
 0x3a5   : > { %v2541_v9 = vpop.f32.mrb[47].mxu1 }
 0x3a6   : > { %v1378_v61 = vadd.f32 %v1377_v11, %v1233_v52  ;;  %v2542_v15 = vadd.f32 %v2541_v9, %v2540_v60  ;;  %v3367_v18 = vpack.c.bf16 %v4502_v6, %v4500_v4 }
 0x3a8   : > { %v1238_v29 = vadd.f32 %v2542_v15, %v4480_v53  ;;  %v2543_v30 = vpop.f32.mrb[48].mxu1  ;;  %3368 = vmatprep.subr.bf16.mxu0 %v3367_v18  ;;  %v4509_v49 = vmax.f32 %v1378_v61, 0.0 }
 0x3a9   : > { %v2544_v41 = vpop.f32.mrb[49].mxu1  ;;  %3370 = vmatpush3.bf16.msra.mxu0 %v3367_v18 }
 0x3aa   : > { %v1383_v7 = vadd.f32 %v4459_v10, %v1238_v29  ;;  %v2545_v43 = vadd.f32 %v2544_v41, %v2543_v30 }
 0x3ac   : > { %v4511_v51 = vmax.f32 %v1383_v7, 0.0  ;;  %v1243_v57 = vadd.f32 %v2545_v43, %v4480_v53  ;;  %v2546_v11 = vpop.f32.mrb[50].mxu1 }
 0x3ad   : > { %v2547_v59 = vpop.f32.mrb[51].mxu1 }
 0x3ae   : > { %v1388_v62 = vadd.f32 %v4463_v14, %v1243_v57  ;;  %v2548_v45 = vadd.f32 %v2547_v59, %v2546_v11  ;;  %v3371_v40 = vpack.c.bf16 %v4511_v51, %v4509_v49 }
 0x3b0   : > { %v1248_v44 = vadd.f32 %v2548_v45, %v4480_v53  ;;  %v2549_v28 = vpop.f32.mrb[52].mxu1  ;;  %3372 = vmatprep.subr.bf16.mxu0 %v3371_v40  ;;  %v4519_v32 = vmax.f32 %v1388_v62, 0.0  ;;  %v1780_v45 = vld [vmem:[#allocation8 + $0x80] sm:$0xff] }
 0x3b1   : > { %v2550_v10 = vpop.f32.mrb[53].mxu1  ;;  %3374 = vmatpush3.bf16.msra.mxu0 %v3371_v40  ;;  %v1781_v40 = vld [vmem:[#allocation8 + $0x88] sm:$0xff] }
 0x3b2   : > { %v1393_v36 = vadd.f32 %v4461_v13, %v1248_v44  ;;  %v2551_v25 = vadd.f32 %v2550_v10, %v2549_v28 }
 0x3b4   : > { %v4521_v54 = vmax.f32 %v1393_v36, 0.0  ;;  %v1253_v63 = vadd.f32 %v2551_v25, %v4480_v53  ;;  %v2552_v14 = vpop.f32.mrb[54].mxu1  ;;  %v1764_v36 = vld [vmem:[#allocation8] sm:$0xff]  ;;  %v1765_v25 = vld [vmem:[#allocation8 + $0x8] sm:$0xff] }
 0x3b5   : > { %v2553_v47 = vpop.f32.mrb[55].mxu1 }
 0x3b6   : > { %v1398_v37 = vadd.f32 %v4467_v17, %v1253_v63  ;;  %v2554_v39 = vadd.f32 %v2553_v47, %v2552_v14  ;;  %v3375_v8 = vpack.c.bf16 %v4521_v54, %v4519_v32  ;;  %v1782_v63 = vld [vmem:[#allocation8 + $0x90] sm:$0xff]  ;;  %v1783_v14 = vld [vmem:[#allocation8 + $0x98] sm:$0xff] }
 0x3b7   : > { %v3427_v47 = vpack.c.bf16 %v1783_v14, %v1782_v63  ;;  %v1792_v63 = vld [vmem:[#allocation8 + $0xe0] sm:$0xff]  ;;  %v1793_v14 = vld [vmem:[#allocation8 + $0xe8] sm:$0xff] }
 0x3b8   : > { %v1258_v27 = vadd.f32 %v2554_v39, %v4480_v53  ;;  %v2555_v48 = vpop.f32.mrb[56].mxu1  ;;  %3376 = vmatprep.subr.bf16.mxu0 %v3375_v8  ;;  %v4529_v24 = vmax.f32 %v1398_v37, 0.0  ;;  %v1767_v37 = vld [vmem:[#allocation8 + $0x18] sm:$0xff]  ;;  %v1784_v39 = vld [vmem:[#allocation8 + $0xa0] sm:$0xff] }
 0x3b9   : > { %v2556_v13 = vpop.f32.mrb[57].mxu1  ;;  %3378 = vmatpush3.bf16.msra.mxu0 %v3375_v8  ;;  %v1785_v8 = vld [vmem:[#allocation8 + $0xa8] sm:$0xff] }
 0x3ba   : > { %v1403_v35 = vadd.f32 %v4465_v16, %v1258_v27  ;;  %v2557_v33 = vadd.f32 %v2556_v13, %v2555_v48  ;;  %v4555_v27 = vld [vmem:[#allocation2 + $0x8] sm:$0xff]  ;;  %v4558_v48 = vld [vmem:[#allocation2 + $0x10] sm:$0xff] }
 0x3bc   : > { %v4531_v0 = vmax.f32 %v1403_v35, 0.0  ;;  %v1263_v1 = vadd.f32 %v2557_v33, %v4480_v53  ;;  %v2558_v17 = vpop.f32.mrb[58].mxu1  ;;  %v3431_v35 = vpack.c.bf16 %v1785_v8, %v1784_v39  ;;  %v1768_v33 = vld [vmem:[#allocation8 + $0x20] sm:$0xff]  ;;  %v1777_v8 = vld [vmem:[#allocation8 + $0x68] sm:$0xff] }
 0x3bd   : > { %v2559_v2 = vpop.f32.mrb[59].mxu1  ;;  %v1776_v39 = vld [vmem:[#allocation8 + $0x60] sm:$0xff] }
 0x3be   : > { %v1408_v52 = vadd.f32 %v4471_v20, %v1263_v1  ;;  %v2560_v60 = vadd.f32 %v2559_v2, %v2558_v17  ;;  %v3379_v9 = vpack.c.bf16 %v4531_v0, %v4529_v24  ;;  %v1769_v1 = vld [vmem:[#allocation8 + $0x28] sm:$0xff]  ;;  %v1786_v17 = vld [vmem:[#allocation8 + $0xb0] sm:$0xff]  ;;  %v1787_v2 = vld [vmem:[#allocation8 + $0xb8] sm:$0xff] }
 0x3c0   : > { %v1268_v61 = vadd.f32 %v2560_v60, %v4480_v53  ;;  %v2561_v15 = vpop.f32.mrb[60].mxu1  ;;  %3380 = vmatprep.subr.bf16.mxu0 %v3379_v9  ;;  %v4539_v30 = vmax.f32 %v1408_v52, 0.0  ;;  %v4561_v52 = vld [vmem:[#allocation2 + $0x18] sm:$0xff]  ;;  %v4564_v60 = vld [vmem:[#allocation2 + $0x20] sm:$0xff] }
 0x3c1   : > { %v2562_v16 = vpop.f32.mrb[61].mxu1  ;;  %3382 = vmatpush3.bf16.msra.mxu0 %v3379_v9  ;;  %v3433_v9 = vpack.c.bf16 %v1769_v1, %v1768_v33  ;;  %v4585_v33 = vld [vmem:[#allocation2 + $0x58] sm:$0xff]  ;;  %v4588_v1 = vld [vmem:[#allocation2 + $0x60] sm:$0xff] }
 0x3c2   : > { %v1413_v18 = vadd.f32 %v4469_v19, %v1268_v61  ;;  %v2563_v29 = vadd.f32 %v2562_v16, %v2561_v15  ;;  %v3435_v61 = vpack.c.bf16 %v1787_v2, %v1786_v17  ;;  %v1770_v15 = vld [vmem:[#allocation8 + $0x30] sm:$0xff]  ;;  %v1771_v16 = vld [vmem:[#allocation8 + $0x38] sm:$0xff]  ;;  %v3449_v17 = vpack.c.bf16 %v1777_v8, %v1776_v39 }
 0x3c4   : > { %v4541_v41 = vmax.f32 %v1413_v18, 0.0  ;;  %v1273_v7 = vadd.f32 %v2563_v29, %v4480_v53  ;;  %v2564_v20 = vpop.f32.mrb[62].mxu1  ;;  %v1788_v18 = vld [vmem:[#allocation8 + $0xc0] sm:$0xff]  ;;  %v1789_v29 = vld [vmem:[#allocation8 + $0xc8] sm:$0xff] }
 0x3c5   : > { %v2565_v43 = vpop.f32.mrb[63].mxu1 }
 0x3c6   : > { %v1418_v57 = vadd.f32 %v4475_v23, %v1273_v7  ;;  %v2566_v11 = vadd.f32 %v2565_v43, %v2564_v20  ;;  %v3383_v59 = vpack.c.bf16 %v4541_v41, %v4539_v30  ;;  %v3423_v23 = vpack.c.bf16 %v1781_v40, %v1780_v45  ;;  %v4567_v7 = vld [vmem:[#allocation2 + $0x28] sm:$0xff]  ;;  %v4570_v20 = vld [vmem:[#allocation2 + $0x30] sm:$0xff]  ;;  %v4573_v45 = vld [vmem:[#allocation2 + $0x38] sm:$0xff] }
 0x3c7   : > { %v3437_v43 = vpack.c.bf16 %v1771_v16, %v1770_v15  ;;  %v4576_v40 = vld [vmem:[#allocation2 + $0x40] sm:$0xff]  ;;  %v4597_v15 = vld [vmem:[#allocation2 + $0x78] sm:$0xff]  ;;  %v1778_v16 = vld [vmem:[#allocation8 + $0x70] sm:$0xff] }
 0x3c8   : > { %v1278_v62 = vadd.f32 %v2566_v11, %v4480_v53  ;;  %3384 = vmatprep.subr.bf16.mxu0 %v3383_v59  ;;  %v4549_v44 = vmax.f32 %v1418_v57, 0.0  ;;  %v3425_v53 = vpack.c.bf16 %v1765_v25, %v1764_v36  ;;  %v3439_v57 = vpack.c.bf16 %v1789_v29, %v1788_v18  ;;  %v1772_v11 = vld [vmem:[#allocation8 + $0x40] sm:$0xff]  ;;  %v1774_v36 = vld [vmem:[#allocation8 + $0x50] sm:$0xff]  ;;  %v1775_v25 = vld [vmem:[#allocation8 + $0x58] sm:$0xff] }
 0x3c9   : > { %3386 = vmatpush3.bf16.msra.mxu0 %v3383_v59  ;;  %v1773_v59 = vld [vmem:[#allocation8 + $0x48] sm:$0xff]  ;;  %v1779_v18 = vld [vmem:[#allocation8 + $0x78] sm:$0xff] }
 0x3ca   : > { %v1423_v19 = vadd.f32 %v4473_v22, %v1278_v62  ;;  %v1766_v22 = vld [vmem:[#allocation8 + $0x10] sm:$0xff]  ;;  %v3453_v29 = vpack.c.bf16 %v1779_v18, %v1778_v16 }
 0x3cb   : > { %v3429_v13 = vpack.c.bf16 %v1767_v37, %v1766_v22  ;;  %v1790_v62 = vld [vmem:[#allocation8 + $0xd0] sm:$0xff]  ;;  %v3445_v22 = vpack.c.bf16 %v1775_v25, %v1774_v36  ;;  %v3447_v37 = vpack.c.bf16 %v1793_v14, %v1792_v63 }
 0x3cc   : > { %v4551_v28 = vmax.f32 %v1423_v19, 0.0  ;;  %v1791_v19 = vld [vmem:[#allocation8 + $0xd8] sm:$0xff] }
 0x3ce   : > { %v3387_v10 = vpack.c.bf16 %v4551_v28, %v4549_v44 }
 0x3d0   : > { %3388 = vmatprep.subr.bf16.mxu0 %v3387_v10 }
 0x3d1   : > { %3390 = vmatpush3.bf16.msra.mxu0 %v3387_v10  ;;  %v3441_v10 = vpack.c.bf16 %v1773_v59, %v1772_v11 }
 0x3d2   : > { %3424 = vmatprep.subr.bf16.mxu0 %v3423_v23  ;;  %v3443_v23 = vpack.c.bf16 %v1791_v19, %v1790_v62 }
 0x3d4   : > { %3032 = vmatmul.mubr.f32.vlgmr.msra.gmra.mrb[64].mxu0 %v4555_v27 }
 0x3d5   : > { %3034 = vmatprep.mubr.f32.mxu0 %v4558_v48  ;;  %3426 = vmatpush3.bf16.msra.mxu0 %v3425_v53  ;;  %v4579_v53 = vld [vmem:[#allocation2 + $0x48] sm:$0xff] }
 0x3d6   : > { %3428 = vmatprep.subr.bf16.mxu0 %v3427_v47  ;;  %v4582_v47 = vld [vmem:[#allocation2 + $0x50] sm:$0xff] }
 0x3d8   : > { %3035 = vmatmul.mubr.f32.gmra.mrb[66].mxu0 %v4561_v52 }
 0x3d9   : > { %3037 = vmatprep.mubr.f32.mxu0 %v4564_v60  ;;  %3430 = vmatpush3.bf16.msra.mxu0 %v3429_v13  ;;  %v1794_v13 = vld [vmem:[#allocation8 + $0xf0] sm:$0xff] }
 0x3da   : > { %3432 = vmatprep.subr.bf16.mxu0 %v3431_v35  ;;  %v1795_v35 = vld [vmem:[#allocation8 + $0xf8] sm:$0xff] }
 0x3db   : > { %v3451_v2 = vpack.c.bf16 %v1795_v35, %v1794_v13 }
 0x3dc   : > { %3038 = vmatmul.mubr.f32.gmra.mrb[68].mxu0 %v4567_v7 }
 0x3dd   : > { %3040 = vmatprep.mubr.f32.mxu0 %v4570_v20  ;;  %3434 = vmatpush3.bf16.msra.mxu0 %v3433_v9  ;;  %v4591_v9 = vld [vmem:[#allocation2 + $0x68] sm:$0xff] }
 0x3de   : > { %3436 = vmatprep.subr.bf16.mxu0 %v3435_v61  ;;  %v4594_v61 = vld [vmem:[#allocation2 + $0x70] sm:$0xff] }
 0x3e0   : > { %3041 = vmatmul.mubr.f32.gmra.mrb[70].mxu0 %v4573_v45 }
 0x3e1   : > { %3043 = vmatprep.mubr.f32.mxu0 %v4576_v40  ;;  %3438 = vmatpush3.bf16.msra.mxu0 %v3437_v43 }
 0x3e2   : > { %3440 = vmatprep.subr.bf16.mxu0 %v3439_v57 }
 0x3e4   : > { %3044 = vmatmul.mubr.f32.gmra.mrb[72].mxu0 %v4579_v53 }
 0x3e5   : > { %3046 = vmatprep.mubr.f32.mxu0 %v4582_v47  ;;  %3442 = vmatpush3.bf16.msra.mxu0 %v3441_v10 }
 0x3e6   : > { %3444 = vmatprep.subr.bf16.mxu0 %v3443_v23 }
 0x3e8   : > { %3047 = vmatmul.mubr.f32.gmra.mrb[74].mxu0 %v4585_v33 }
 0x3e9   : > { %3049 = vmatprep.mubr.f32.mxu0 %v4588_v1  ;;  %3446 = vmatpush3.bf16.msra.mxu0 %v3445_v22 }
 0x3ea   : > { %3448 = vmatprep.subr.bf16.mxu0 %v3447_v37 }
 0x3ec   : > { %3050 = vmatmul.mubr.f32.gmra.mrb[76].mxu0 %v4591_v9 }
 0x3ed   : > { %3052 = vmatprep.mubr.f32.mxu0 %v4594_v61  ;;  %3450 = vmatpush3.bf16.msra.mxu0 %v3449_v17 }
 0x3ee   : > { %3452 = vmatprep.subr.bf16.mxu0 %v3451_v2 }
 0x3f0   : > { %3053 = vmatmul.mubr.f32.gmra.mrb[78].mxu0 %v4597_v15 }
 0x3f1   : > { %3454 = vmatpush3.bf16.msra.mxu0 %v3453_v29 }
 0x4a7   : > { %v3033_v43 = vpop.f32.mrb[64].mxu0 }
 0x4a8   : > { %v1508_v57 = vpop.f32.mrb[65].mxu0 }
 0x4a9   : > { %v3391_v11 = vpack.c.bf16 %v3033_v43, %v1508_v57  ;;  %1883 = vmatprep.mubr.f32.mxu0 %v1508_v57  ;;  %v1806_v57 = vld [vmem:[#allocation8 + $0x150] sm:$0xff] }
 0x4aa   : > { %1884 = vmatmul.mubr.f32.vlgmr.msra.gmra.mrb[80].mxu0 %v4484_v12 }
 0x4ab   : > { %v3036_v59 = vpop.f32.mrb[66].mxu0  ;;  %3392 = vmatprep.subr.bf16.mxu1 %v3391_v11  ;;  %1888 = vmatprep.mubr.f32.mxu0 %v3033_v43 }
 0x4ac   : > { %v1518_v62 = vpop.f32.mrb[67].mxu0  ;;  %3394 = vmatpush3.bf16.msra.mxu1 %v3391_v11  ;;  %v1807_v11 = vld [vmem:[#allocation8 + $0x158] sm:$0xff] }
 0x4ad   : > { %v3395_v19 = vpack.c.bf16 %v3036_v59, %v1518_v62 }
 0x4ae   : > { %1889 = vmatmul.mubr.f32.gmra.mrb[82].mxu0 %v4486_v21 }
 0x4af   : > { %v3039_v10 = vpop.f32.mrb[68].mxu0  ;;  %3396 = vmatprep.subr.bf16.mxu1 %v3395_v19  ;;  %1893 = vmatprep.mubr.f32.mxu0 %v1518_v62  ;;  %v1808_v62 = vld [vmem:[#allocation8 + $0x160] sm:$0xff] }
 0x4b0   : > { %v1528_v23 = vpop.f32.mrb[69].mxu0  ;;  %3398 = vmatpush3.bf16.msra.mxu1 %v3395_v19  ;;  %v1809_v19 = vld [vmem:[#allocation8 + $0x168] sm:$0xff] }
 0x4b1   : > { %v3399_v36 = vpack.c.bf16 %v3039_v10, %v1528_v23 }
 0x4b2   : > { %1894 = vmatmul.mubr.f32.gmra.mrb[84].mxu0 %v4492_v55 }
 0x4b3   : > { %v3042_v25 = vpop.f32.mrb[70].mxu0  ;;  %3400 = vmatprep.subr.bf16.mxu1 %v3399_v36  ;;  %1898 = vmatprep.mubr.f32.mxu0 %v3036_v59  ;;  %v3475_v59 = vpack.c.bf16 %v1807_v11, %v1806_v57 }
 0x4b4   : > { %v1538_v63 = vpop.f32.mrb[71].mxu0  ;;  %3402 = vmatpush3.bf16.msra.mxu1 %v3399_v36  ;;  %v1811_v36 = vld [vmem:[#allocation8 + $0x178] sm:$0xff] }
 0x4b5   : > { %v3403_v14 = vpack.c.bf16 %v3042_v25, %v1538_v63 }
 0x4b6   : > { %1899 = vmatmul.mubr.f32.gmra.mrb[86].mxu0 %v4494_v58 }
 0x4b7   : > { %v3045_v22 = vpop.f32.mrb[72].mxu0  ;;  %3404 = vmatprep.subr.bf16.mxu1 %v3403_v14  ;;  %1903 = vmatprep.mubr.f32.mxu0 %v1528_v23  ;;  %v1810_v23 = vld [vmem:[#allocation8 + $0x170] sm:$0xff] }
 0x4b8   : > { %v1548_v37 = vpop.f32.mrb[73].mxu0  ;;  %3406 = vmatpush3.bf16.msra.mxu1 %v3403_v14  ;;  %v4634_v14 = vld [vmem:[%s4829_s7] ss:$0 sm:$0xff] }
 0x4b9   : > { %v3407_v39 = vpack.c.bf16 %v3045_v22, %v1548_v37 }
 0x4ba   : > { %1904 = vmatmul.mubr.f32.gmra.mrb[88].mxu0 %v4500_v4 }
 0x4bb   : > { %v3048_v8 = vpop.f32.mrb[74].mxu0  ;;  %3408 = vmatprep.subr.bf16.mxu1 %v3407_v39  ;;  %1908 = vmatprep.mubr.f32.mxu0 %v3039_v10  ;;  %v3479_v10 = vpack.c.bf16 %v1809_v19, %v1808_v62 }
 0x4bc   : > { %v1558_v13 = vpop.f32.mrb[75].mxu0  ;;  %3410 = vmatpush3.bf16.msra.mxu1 %v3407_v39 }
 0x4bd   : > { %v3411_v35 = vpack.c.bf16 %v3048_v8, %v1558_v13 }
 0x4be   : > { %1909 = vmatmul.mubr.f32.gmra.mrb[90].mxu0 %v4502_v6 }
 0x4bf   : > { %v3051_v17 = vpop.f32.mrb[76].mxu0  ;;  %3412 = vmatprep.subr.bf16.mxu1 %v3411_v35  ;;  %1913 = vmatprep.mubr.f32.mxu0 %v1538_v63 }
 0x4c0   : > { %v1568_v2 = vpop.f32.mrb[77].mxu0  ;;  %3414 = vmatpush3.bf16.msra.mxu1 %v3411_v35 }
 0x4c1   : > { %v3415_v16 = vpack.c.bf16 %v3051_v17, %v1568_v2 }
 0x4c2   : > { %1914 = vmatmul.mubr.f32.gmra.mrb[92].mxu0 %v4509_v49 }
 0x4c3   : > { %v3054_v18 = vpop.f32.mrb[78].mxu0  ;;  %3416 = vmatprep.subr.bf16.mxu1 %v3415_v16  ;;  %1918 = vmatprep.mubr.f32.mxu0 %v3042_v25  ;;  %v3483_v25 = vpack.c.bf16 %v1811_v36, %v1810_v23 }
 0x4c4   : > { %v1578_v29 = vpop.f32.mrb[79].mxu0  ;;  %3418 = vmatpush3.bf16.msra.mxu1 %v3415_v16 }
 0x4c5   : > { %v3419_v43 = vpack.c.bf16 %v3054_v18, %v1578_v29 }
 0x4c6   : > { %1919 = vmatmul.mubr.f32.gmra.mrb[94].mxu0 %v4511_v51 }
 0x4c7   : > { %3420 = vmatprep.subr.bf16.mxu1 %v3419_v43  ;;  %1923 = vmatprep.mubr.f32.mxu0 %v1548_v37 }
 0x4c8   : > { %3422 = vmatpush3.bf16.msra.mxu1 %v3419_v43 }
 0x4ca   : > { %1924 = vmatmul.mubr.f32.gmra.mrb[96].mxu0 %v4519_v32 }
 0x4cb   : > { %3088 = vmatmul.mubr.f32.vlgmr.msra.gmra.mrb[64].mxu1 %v4555_v27  ;;  %1928 = vmatprep.mubr.f32.mxu0 %v3045_v22  ;;  %v1796_v27 = vld [vmem:[#allocation8 + $0x100] sm:$0xff] }
 0x4cc   : > { %3090 = vmatprep.mubr.f32.mxu1 %v4558_v48  ;;  %v1797_v48 = vld [vmem:[#allocation8 + $0x108] sm:$0xff]  ;;  %v4639_v22 = vld [vmem:[%s4827_s5] ss:$0 sm:$0xff] }
 0x4ce   : > { %1929 = vmatmul.mubr.f32.gmra.mrb[98].mxu0 %v4521_v54 }
 0x4cf   : > { %3091 = vmatmul.mubr.f32.gmra.mrb[66].mxu1 %v4561_v52  ;;  %1933 = vmatprep.mubr.f32.mxu0 %v1558_v13  ;;  %v3455_v52 = vpack.c.bf16 %v1797_v48, %v1796_v27 }
 0x4d0   : > { %3093 = vmatprep.mubr.f32.mxu1 %v4564_v60  ;;  %v1798_v60 = vld [vmem:[#allocation8 + $0x110] sm:$0xff] }
 0x4d1   : > { %3456 = vmatprep.subr.bf16.mxu1 %v3455_v52 }
 0x4d2   : > { %1934 = vmatmul.mubr.f32.gmra.mrb[100].mxu0 %v4529_v24  ;;  %3458 = vmatpush3.bf16.msra.mxu1 %v3455_v52 }
 0x4d3   : > { %3094 = vmatmul.mubr.f32.gmra.mrb[68].mxu1 %v4567_v7  ;;  %1938 = vmatprep.mubr.f32.mxu0 %v3048_v8  ;;  %v1799_v7 = vld [vmem:[#allocation8 + $0x118] sm:$0xff]  ;;  %v906_v8 = vadd.f32 %v4378_v26, %v4634_v14  ;;  %v916_v26 = vadd.f32 %v4382_v38, %v4634_v14  ;;  %v926_v38 = vadd.f32 %v4386_v34, %v4634_v14 }
 0x4d4   : > { %3096 = vmatprep.mubr.f32.mxu1 %v4570_v20  ;;  %v3459_v20 = vpack.c.bf16 %v1799_v7, %v1798_v60  ;;  %v936_v34 = vadd.f32 %v4390_v50, %v4634_v14 }
 0x4d6   : > { %1939 = vmatmul.mubr.f32.gmra.mrb[102].mxu0 %v4531_v0  ;;  %3460 = vmatprep.subr.bf16.mxu1 %v3459_v20 }
 0x4d7   : > { %3097 = vmatmul.mubr.f32.gmra.mrb[70].mxu1 %v4573_v45  ;;  %1943 = vmatprep.mubr.f32.mxu0 %v1568_v2  ;;  %v1800_v45 = vld [vmem:[#allocation8 + $0x120] sm:$0xff] }
 0x4d8   : > { %3099 = vmatprep.mubr.f32.mxu1 %v4576_v40  ;;  %3462 = vmatpush3.bf16.msra.mxu1 %v3459_v20  ;;  %v1801_v40 = vld [vmem:[#allocation8 + $0x128] sm:$0xff] }
 0x4da   : > { %1944 = vmatmul.mubr.f32.gmra.mrb[104].mxu0 %v4539_v30 }
 0x4db   : > { %3100 = vmatmul.mubr.f32.gmra.mrb[72].mxu1 %v4579_v53  ;;  %1948 = vmatprep.mubr.f32.mxu0 %v3051_v17  ;;  %v3463_v53 = vpack.c.bf16 %v1801_v40, %v1800_v45 }
 0x4dc   : > { %3102 = vmatprep.mubr.f32.mxu1 %v4582_v47  ;;  %v1802_v47 = vld [vmem:[#allocation8 + $0x130] sm:$0xff] }
 0x4dd   : > { %3464 = vmatprep.subr.bf16.mxu1 %v3463_v53 }
 0x4de   : > { %1949 = vmatmul.mubr.f32.gmra.mrb[106].mxu0 %v4541_v41  ;;  %3466 = vmatpush3.bf16.msra.mxu1 %v3463_v53 }
 0x4df   : > { %3103 = vmatmul.mubr.f32.gmra.mrb[74].mxu1 %v4585_v33  ;;  %1953 = vmatprep.mubr.f32.mxu0 %v1578_v29  ;;  %v1803_v33 = vld [vmem:[#allocation8 + $0x138] sm:$0xff] }
 0x4e0   : > { %3105 = vmatprep.mubr.f32.mxu1 %v4588_v1  ;;  %v3467_v1 = vpack.c.bf16 %v1803_v33, %v1802_v47 }
 0x4e2   : > { %1954 = vmatmul.mubr.f32.gmra.mrb[108].mxu0 %v4549_v44  ;;  %3468 = vmatprep.subr.bf16.mxu1 %v3467_v1 }
 0x4e3   : > { %3106 = vmatmul.mubr.f32.gmra.mrb[76].mxu1 %v4591_v9  ;;  %1958 = vmatprep.mubr.f32.mxu0 %v3054_v18  ;;  %v1804_v9 = vld [vmem:[#allocation8 + $0x140] sm:$0xff]  ;;  %v911_v18 = vadd.f32 %v4380_v31, %v4634_v14  ;;  %v921_v31 = vadd.f32 %v4384_v46, %v4634_v14  ;;  %v931_v46 = vadd.f32 %v4388_v42, %v4634_v14 }
 0x4e4   : > { %3108 = vmatprep.mubr.f32.mxu1 %v4594_v61  ;;  %3470 = vmatpush3.bf16.msra.mxu1 %v3467_v1  ;;  %v1805_v61 = vld [vmem:[#allocation8 + $0x148] sm:$0xff]  ;;  %v941_v42 = vadd.f32 %v4392_v3, %v4634_v14 }
 0x4e6   : > { %1959 = vmatmul.mubr.f32.gmra.mrb[110].mxu0 %v4551_v28 }
 0x4e7   : > { %3109 = vmatmul.mubr.f32.gmra.mrb[78].mxu1 %v4597_v15  ;;  %v3471_v15 = vpack.c.bf16 %v1805_v61, %v1804_v9 }
 0x4e9   : > { %3472 = vmatprep.subr.bf16.mxu1 %v3471_v15 }
 0x4ea   : > { %3474 = vmatpush3.bf16.msra.mxu1 %v3471_v15 }
 0x4eb   : > { %3476 = vmatprep.subr.bf16.mxu1 %v3475_v59 }
 0x4ee   : > { %3478 = vmatpush3.bf16.msra.mxu1 %v3475_v59 }
 0x4ef   : > { %3480 = vmatprep.subr.bf16.mxu1 %v3479_v10 }
 0x4f2   : > { %3482 = vmatpush3.bf16.msra.mxu1 %v3479_v10 }
 0x4f3   : > { %3484 = vmatprep.subr.bf16.mxu1 %v3483_v25 }
 0x4f6   : > { %3486 = vmatpush3.bf16.msra.mxu1 %v3483_v25 }
 0x57d   : > { %v2695_v63 = vpop.f32.mrb[80].mxu0 }
 0x57e   : > { %v2696_v37 = vpop.f32.mrb[81].mxu0 }
 0x57f   : > { %v2697_v39 = vadd.f32 %v2696_v37, %v2695_v63 }
 0x581   : > { %v1886_v13 = vadd.f32 %v2697_v39, %v4639_v22  ;;  %v2698_v35 = vpop.f32.mrb[82].mxu0 }
 0x582   : > { %v2699_v17 = vpop.f32.mrb[83].mxu0 }
 0x583   : > { %v2700_v2 = vadd.f32 %v2699_v17, %v2698_v35  ;;  %v4644_v16 = vadd.f32 %v1886_v13, %v906_v8 }
 0x585   : > { %v1891_v29 = vadd.f32 %v2700_v2, %v4639_v22  ;;  %v2701_v43 = vpop.f32.mrb[84].mxu0 }
 0x586   : > { %v2702_v27 = vpop.f32.mrb[85].mxu0 }
 0x587   : > { %v2703_v48 = vadd.f32 %v2702_v27, %v2701_v43  ;;  %v4649_v52 = vadd.f32 %v1891_v29, %v911_v18 }
 0x589   : > { %v1896_v60 = vadd.f32 %v2703_v48, %v4639_v22  ;;  %v2704_v7 = vpop.f32.mrb[86].mxu0  ;;  %v4860_v48 = vld [vmem:[#allocation19_spill] sm:$0xff] }
 0x58a   : > { %v2705_v20 = vpop.f32.mrb[87].mxu0 }
 0x58b   : > { %v2706_v45 = vadd.f32 %v2705_v20, %v2704_v7  ;;  %v4654_v40 = vadd.f32 %v1896_v60, %v916_v26  ;;  %v946_v26 = vadd.f32 %v4860_v48, %v4634_v14 }
 0x58d   : > { %v1901_v53 = vadd.f32 %v2706_v45, %v4639_v22  ;;  %v2707_v47 = vpop.f32.mrb[88].mxu0 }
 0x58e   : > { %v2708_v33 = vpop.f32.mrb[89].mxu0 }
 0x58f   : > { %v2709_v1 = vadd.f32 %v2708_v33, %v2707_v47  ;;  %v4659_v9 = vadd.f32 %v1901_v53, %v921_v31 }
 0x591   : > { %v1906_v61 = vadd.f32 %v2709_v1, %v4639_v22  ;;  %v2710_v15 = vpop.f32.mrb[90].mxu0 }
 0x592   : > { %v2711_v57 = vpop.f32.mrb[91].mxu0 }
 0x593   : > { %v2712_v11 = vadd.f32 %v2711_v57, %v2710_v15  ;;  %v4664_v59 = vadd.f32 %v1906_v61, %v926_v38  ;;  %v4861_v61 = vld [vmem:[#allocation20_spill] sm:$0xff] }
 0x594   : > { %v951_v15 = vadd.f32 %v4861_v61, %v4634_v14 }
 0x595   : > { %v1911_v62 = vadd.f32 %v2712_v11, %v4639_v22  ;;  %v2713_v19 = vpop.f32.mrb[92].mxu0 }
 0x596   : > { %v2714_v10 = vpop.f32.mrb[93].mxu0 }
 0x597   : > { %v2715_v23 = vadd.f32 %v2714_v10, %v2713_v19  ;;  %v4669_v36 = vadd.f32 %v1911_v62, %v931_v46 }
 0x599   : > { %v1916_v25 = vadd.f32 %v2715_v23, %v4639_v22  ;;  %v2716_v63 = vpop.f32.mrb[94].mxu0 }
 0x59a   : > { %v2717_v37 = vpop.f32.mrb[95].mxu0 }
 0x59b   : > { %v2718_v39 = vadd.f32 %v2717_v37, %v2716_v63  ;;  %v4674_v8 = vadd.f32 %v1916_v25, %v936_v34  ;;  %v4862_v63 = vld [vmem:[#allocation21_spill] sm:$0xff] }
 0x59c   : > { %v956_v37 = vadd.f32 %v4862_v63, %v4634_v14 }
 0x59d   : > { %v1921_v13 = vadd.f32 %v2718_v39, %v4639_v22  ;;  %v2719_v35 = vpop.f32.mrb[96].mxu0 }
 0x59e   : > { %v3089_v17 = vpop.f32.mrb[64].mxu1  ;;  %v2720_v2 = vpop.f32.mrb[97].mxu0 }
 0x59f   : > { %v1733_v18 = vmul.f32 2.0, %v3089_v17  ;;  %v2721_v29 = vadd.f32 %v2720_v2, %v2719_v35  ;;  %v1653_v43 = vpop.f32.mrb[65].mxu1  ;;  %v4679_v27 = vadd.f32 %v1921_v13, %v941_v42 }
 0x5a0   : > { %v1732_v50 = vmul.f32 2.0, %v1653_v43 }
 0x5a1   : > { %v1926_v60 = vadd.f32 %v2721_v29, %v4639_v22  ;;  %v2722_v7 = vpop.f32.mrb[98].mxu0  ;;  %v1749_v31 = vsub.f32 %v1733_v18, %v4486_v21 }
 0x5a2   : > { %v1748_v20 = vsub.f32 %v1732_v50, %v4484_v12  ;;  %v3092_v3 = vpop.f32.mrb[66].mxu1  ;;  %v2723_v45 = vpop.f32.mrb[99].mxu0  ;;  %v4863_v50 = vld [vmem:[#allocation22_spill] sm:$0xff] }
 0x5a3   : > { %v1735_v53 = vmul.f32 2.0, %v3092_v3  ;;  %v2724_v47 = vadd.f32 %v2723_v45, %v2722_v7  ;;  %v1663_v33 = vpop.f32.mrb[67].mxu1  ;;  %v4686_v1 = vadd.f32 %v1926_v60, %v946_v26  ;;  %v961_v48 = vadd.f32 %v4863_v50, %v4634_v14 }
 0x5a4   : > { %v1734_v38 = vmul.f32 2.0, %v1663_v33  ;;  %3143 = vmatprep.mubr.f32.mxu1 %v1748_v20  ;;  %v4864_v33 = vld [vmem:[#allocation23_spill] sm:$0xff] }
 0x5a5   : > { %v1931_v57 = vadd.f32 %v2724_v47, %v4639_v22  ;;  %v2725_v11 = vpop.f32.mrb[100].mxu0  ;;  %3144 = vmatmul.mubr.f32.vlgmr.msra.gmra.mrb[16].mxu1 %v1749_v31  ;;  %v1751_v21 = vsub.f32 %v1735_v53, %v4494_v58 }
 0x5a6   : > { %v1750_v12 = vsub.f32 %v1734_v38, %v4492_v55  ;;  %v3095_v46 = vpop.f32.mrb[68].mxu1  ;;  %v2726_v62 = vpop.f32.mrb[101].mxu0  ;;  %v966_v38 = vadd.f32 %v4864_v33, %v4634_v14 }
 0x5a7   : > { %v1737_v19 = vmul.f32 2.0, %v3095_v46  ;;  %v2727_v10 = vadd.f32 %v2726_v62, %v2725_v11  ;;  %v1673_v23 = vpop.f32.mrb[69].mxu1  ;;  %v4693_v34 = vadd.f32 %v1931_v57, %v951_v15 }
 0x5a8   : > { %v1736_v25 = vmul.f32 2.0, %v1673_v23  ;;  %3146 = vmatprep.mubr.f32.mxu1 %v1750_v12 }
 0x5a9   : > { %v1936_v39 = vadd.f32 %v2727_v10, %v4639_v22  ;;  %v2728_v42 = vpop.f32.mrb[102].mxu0  ;;  %3147 = vmatmul.mubr.f32.gmra.mrb[18].mxu1 %v1751_v21  ;;  %v1753_v58 = vsub.f32 %v1737_v19, %v4502_v6  ;;  %v4865_v10 = vld [vmem:[#allocation24_spill] sm:$0xff] }
 0x5aa   : > { %v1752_v55 = vsub.f32 %v1736_v25, %v4500_v4  ;;  %v3098_v13 = vpop.f32.mrb[70].mxu1  ;;  %v2729_v35 = vpop.f32.mrb[103].mxu0  ;;  %v971_v23 = vadd.f32 %v4865_v10, %v4634_v14 }
 0x5ab   : > { %v1739_v17 = vmul.f32 2.0, %v3098_v13  ;;  %v2730_v2 = vadd.f32 %v2729_v35, %v2728_v42  ;;  %v1683_v18 = vpop.f32.mrb[71].mxu1  ;;  %v4700_v29 = vadd.f32 %v1936_v39, %v956_v37 }
 0x5ac   : > { %v1738_v43 = vmul.f32 2.0, %v1683_v18  ;;  %3149 = vmatprep.mubr.f32.mxu1 %v1752_v55 }
 0x5ad   : > { %v1941_v26 = vadd.f32 %v2730_v2, %v4639_v22  ;;  %v2731_v60 = vpop.f32.mrb[104].mxu0  ;;  %3150 = vmatmul.mubr.f32.gmra.mrb[20].mxu1 %v1753_v58  ;;  %v1755_v6 = vsub.f32 %v1739_v17, %v4511_v51  ;;  %v976_v17 = vadd.f32 %v4418_v5, %v4634_v14  ;;  %v981_v5 = vadd.f32 %v4422_v56, %v4634_v14 }
 0x5ae   : > { %v1754_v4 = vsub.f32 %v1738_v43, %v4509_v49  ;;  %v3101_v7 = vpop.f32.mrb[72].mxu1  ;;  %v2732_v20 = vpop.f32.mrb[105].mxu0 }
 0x5af   : > { %v1741_v3 = vmul.f32 2.0, %v3101_v7  ;;  %v2733_v45 = vadd.f32 %v2732_v20, %v2731_v60  ;;  %v1693_v31 = vpop.f32.mrb[73].mxu1  ;;  %v4707_v53 = vadd.f32 %v1941_v26, %v961_v48 }
 0x5b0   : > { %v1740_v47 = vmul.f32 2.0, %v1693_v31  ;;  %3152 = vmatprep.mubr.f32.mxu1 %v1754_v4 }
 0x5b1   : > { %v1946_v61 = vadd.f32 %v2733_v45, %v4639_v22  ;;  %v2734_v15 = vpop.f32.mrb[106].mxu0  ;;  %3153 = vmatmul.mubr.f32.gmra.mrb[22].mxu1 %v1755_v6  ;;  %v1757_v51 = vsub.f32 %v1741_v3, %v4521_v54 }
 0x5b2   : > { %v1756_v49 = vsub.f32 %v1740_v47, %v4519_v32  ;;  %v3104_v57 = vpop.f32.mrb[74].mxu1  ;;  %v2735_v11 = vpop.f32.mrb[107].mxu0 }
 0x5b3   : > { %v1743_v12 = vmul.f32 2.0, %v3104_v57  ;;  %v2736_v46 = vadd.f32 %v2735_v11, %v2734_v15  ;;  %v1703_v62 = vpop.f32.mrb[75].mxu1  ;;  %v4714_v21 = vadd.f32 %v1946_v61, %v966_v38 }
 0x5b4   : > { %v1742_v19 = vmul.f32 2.0, %v1703_v62  ;;  %3155 = vmatprep.mubr.f32.mxu1 %v1756_v49 }
 0x5b5   : > { %v1951_v25 = vadd.f32 %v2736_v46, %v4639_v22  ;;  %v2737_v63 = vpop.f32.mrb[108].mxu0  ;;  %3156 = vmatmul.mubr.f32.gmra.mrb[24].mxu1 %v1757_v51  ;;  %v1759_v54 = vsub.f32 %v1743_v12, %v4531_v0 }
 0x5b6   : > { %v1758_v32 = vsub.f32 %v1742_v19, %v4529_v24  ;;  %v3107_v37 = vpop.f32.mrb[76].mxu1  ;;  %v2738_v39 = vpop.f32.mrb[109].mxu0 }
 0x5b7   : > { %v1745_v42 = vmul.f32 2.0, %v3107_v37  ;;  %v2739_v55 = vadd.f32 %v2738_v39, %v2737_v63  ;;  %v1713_v13 = vpop.f32.mrb[77].mxu1  ;;  %v4721_v35 = vadd.f32 %v1951_v25, %v971_v23 }
 0x5b8   : > { %v1744_v58 = vmul.f32 2.0, %v1713_v13  ;;  %3158 = vmatprep.mubr.f32.mxu1 %v1758_v32 }
 0x5b9   : > { %v1956_v2 = vadd.f32 %v2739_v55, %v4639_v22  ;;  %v2740_v18 = vpop.f32.mrb[110].mxu0  ;;  %3159 = vmatmul.mubr.f32.gmra.mrb[26].mxu1 %v1759_v54  ;;  %v1761_v0 = vsub.f32 %v1745_v42, %v4541_v41 }
 0x5ba   : > { %v1760_v24 = vsub.f32 %v1744_v58, %v4539_v30  ;;  %v3110_v43 = vpop.f32.mrb[78].mxu1  ;;  %v2741_v50 = vpop.f32.mrb[111].mxu0 }
 0x5bb   : > { %v1747_v48 = vmul.f32 2.0, %v3110_v43  ;;  %v2742_v26 = vadd.f32 %v2741_v50, %v2740_v18  ;;  %v1723_v60 = vpop.f32.mrb[79].mxu1  ;;  %v4728_v4 = vadd.f32 %v1956_v2, %v976_v17 }
 0x5bc   : > { %v1746_v7 = vmul.f32 2.0, %v1723_v60  ;;  %3161 = vmatprep.mubr.f32.mxu1 %v1760_v24 }
 0x5bd   : > { %v1961_v20 = vadd.f32 %v2742_v26, %v4639_v22  ;;  %3162 = vmatmul.mubr.f32.gmra.mrb[28].mxu1 %v1761_v0  ;;  %v1763_v6 = vsub.f32 %v1747_v48, %v4551_v28 }
 0x5be   : > { %v1762_v30 = vsub.f32 %v1746_v7, %v4549_v44 }
 0x5bf   : > { %v3515_v3 = vadd.f32 %v1961_v20, %v981_v5 }
 0x5c0   : > { %3164 = vmatprep.mubr.f32.mxu1 %v1762_v30 }
 0x5c1   : > { %3165 = vmatmul.mubr.f32.gmra.mrb[30].mxu1 %v1763_v6 }
 0x678   : > { %v3145_v41 = vpop.f32.mrb[16].mxu1 }
 0x679   : > { %v3488_v45 = vadd.f32 %v4649_v52, %v3145_v41  ;;  %v2030_v31 = vpop.f32.mrb[17].mxu1 }
 0x67a   : > { %v3490_v47 = vadd.f32 %v4644_v16, %v2030_v31 }
 0x67b   : > { %v2126_v33 = vmax.f32 %v3488_v45, 0.0 }
 0x67c   : > { %v2125_v38 = vmax.f32 %v3490_v47, 0.0  ;;  %v3148_v61 = vpop.f32.mrb[18].mxu1 }
 0x67d   : > { %2142 = vst [vmem:[%s4738_s25 + $0x8] sm:$0xff] %v2126_v33  ;;  %v3492_v56 = vadd.f32 %v4659_v9, %v3148_v61  ;;  %v2040_v44 = vpop.f32.mrb[19].mxu1 }
 0x67e   : > { %2141 = vst [vmem:[%s4738_s25] sm:$0xff] %v2125_v38  ;;  %v3494_v28 = vadd.f32 %v4654_v40, %v2040_v44 }
 0x67f   : > { %v2128_v14 = vmax.f32 %v3492_v56, 0.0 }
 0x680   : > { %v2127_v22 = vmax.f32 %v3494_v28, 0.0  ;;  %v3151_v16 = vpop.f32.mrb[20].mxu1 }
 0x681   : > { %2144 = vst [vmem:[%s4738_s25 + $0x18] sm:$0xff] %v2128_v14  ;;  %v3496_v52 = vadd.f32 %v4669_v36, %v3151_v16  ;;  %v2050_v15 = vpop.f32.mrb[21].mxu1 }
 0x682   : > { %2143 = vst [vmem:[%s4738_s25 + $0x10] sm:$0xff] %v2127_v22  ;;  %v3498_v49 = vadd.f32 %v4664_v59, %v2050_v15 }
 0x683   : > { %v2130_v57 = vmax.f32 %v3496_v52, 0.0 }
 0x684   : > { %v2129_v11 = vmax.f32 %v3498_v49, 0.0  ;;  %v3154_v9 = vpop.f32.mrb[22].mxu1 }
 0x685   : > { %2146 = vst [vmem:[%s4738_s25 + $0x28] sm:$0xff] %v2130_v57  ;;  %v3500_v51 = vadd.f32 %v4679_v27, %v3154_v9  ;;  %v2060_v40 = vpop.f32.mrb[23].mxu1 }
 0x686   : > { %2145 = vst [vmem:[%s4738_s25 + $0x20] sm:$0xff] %v2129_v11  ;;  %v3502_v12 = vadd.f32 %v4674_v8, %v2060_v40 }
 0x687   : > { %v2132_v46 = vmax.f32 %v3500_v51, 0.0 }
 0x688   : > { %v2131_v62 = vmax.f32 %v3502_v12, 0.0  ;;  %v3157_v36 = vpop.f32.mrb[24].mxu1 }
 0x689   : > { %2148 = vst [vmem:[%s4738_s25 + $0x38] sm:$0xff] %v2132_v46  ;;  %v3504_v19 = vadd.f32 %v4693_v34, %v3157_v36  ;;  %v2070_v59 = vpop.f32.mrb[25].mxu1 }
 0x68a   : > { %2147 = vst [vmem:[%s4738_s25 + $0x30] sm:$0xff] %v2131_v62  ;;  %v3506_v10 = vadd.f32 %v4686_v1, %v2070_v59 }
 0x68b   : > { %v2134_v23 = vmax.f32 %v3504_v19, 0.0 }
 0x68c   : > { %v2133_v25 = vmax.f32 %v3506_v10, 0.0  ;;  %v3160_v27 = vpop.f32.mrb[26].mxu1 }
 0x68d   : > { %2150 = vst [vmem:[%s4738_s25 + $0x48] sm:$0xff] %v2134_v23  ;;  %v3508_v63 = vadd.f32 %v4707_v53, %v3160_v27  ;;  %v2080_v8 = vpop.f32.mrb[27].mxu1 }
 0x68e   : > { %2149 = vst [vmem:[%s4738_s25 + $0x40] sm:$0xff] %v2133_v25  ;;  %v3510_v32 = vadd.f32 %v4700_v29, %v2080_v8 }
 0x68f   : > { %v2136_v37 = vmax.f32 %v3508_v63, 0.0 }
 0x690   : > { %v2135_v34 = vmax.f32 %v3510_v32, 0.0  ;;  %v3163_v39 = vpop.f32.mrb[28].mxu1 }
 0x691   : > { %2152 = vst [vmem:[%s4738_s25 + $0x58] sm:$0xff] %v2136_v37  ;;  %v3512_v1 = vadd.f32 %v4721_v35, %v3163_v39  ;;  %v2090_v54 = vpop.f32.mrb[29].mxu1 }
 0x692   : > { %2151 = vst [vmem:[%s4738_s25 + $0x50] sm:$0xff] %v2135_v34  ;;  %v3514_v42 = vadd.f32 %v4714_v21, %v2090_v54 }
 0x693   : > { %v2138_v53 = vmax.f32 %v3512_v1, 0.0 }
 0x694   : > { %v2137_v55 = vmax.f32 %v3514_v42, 0.0  ;;  %v3166_v13 = vpop.f32.mrb[30].mxu1 }
 0x695   : > { %2154 = vst [vmem:[%s4738_s25 + $0x68] sm:$0xff] %v2138_v53  ;;  %v3516_v29 = vadd.f32 %v3515_v3, %v3166_v13  ;;  %v2100_v58 = vpop.f32.mrb[31].mxu1 }
 0x696   : > { %2153 = vst [vmem:[%s4738_s25 + $0x60] sm:$0xff] %v2137_v55  ;;  %v3518_v17 = vadd.f32 %v4728_v4, %v2100_v58 }
 0x697   : > { %v2140_v35 = vmax.f32 %v3516_v29, 0.0 }
 0x698   : > { %v2139_v21 = vmax.f32 %v3518_v17, 0.0 }
 0x699   : > { %2156 = vst [vmem:[%s4738_s25 + $0x78] sm:$0xff] %v2140_v35 }
 0x69a   : > { %2155 = vst [vmem:[%s4738_s25 + $0x70] sm:$0xff] %v2139_v21 }
 0x69b   : > { %3797 = shalt.err (!%p3794_p0)
}
 0x69c   : > { %s3798_s10 = scalar_lea.hbm %s4772_s17, 2048  ;;  %s3802_s26 = scalar_lea.hbm %s4830_s8, 4096 }
 0x69d   : > { %p3799_p4 = scmp.ne.s32.totalorder %s4772_s17, %s3798_s10  ;;  %p3803_p6 = scmp.lt.u32.totalorder %s4772_s17, %s4830_s8 }
 0x69e   : > { %p3804_p3 = scmp.lt.u32.totalorder %s3802_s26, %s3798_s10  ;;  %p3806_p7 = scmp.lt.u32.totalorder %s3798_s10, %s4772_s17 }
 0x69f   : > { %p3800_p11 = pnand %p3799_p4, %p4090_p9 }
 0x6a0   : > { %p3805_p5 = por %p3804_p3, %p3803_p6 }
 0x6a1   : > { %p3801_p8 = pneg %p3800_p11 }
 0x6a2   : > { %p3807_p12 = por %p3806_p7, %p3805_p5 }
 0x6a4   : > { %p3808_p1 = pnand %p3807_p12, %p3801_p8 }
 0x6a6   : > { %3811 = shalt.err (!%p3808_p1)
}
 0x6a7   : > { %s3872_s22 = smov 128   ;;  %s3873_s15 = smov 8  }
 0x6a8   : > { %3553 = dma.vmem_to_hbm [thread:$0]  (%p4090_p9), %s4774_s14, 2048, %s4772_s17, %s4780_s9, %s3872_s22, %s3872_s22, %s3873_s15  }
 0x6a9 PF: > { %s4866_s12 = sld [smem:[#allocation17_spill]]  ;;  %s4867_s19 = sld [smem:[#allocation18_spill]] }
 0x6aa   : > { %p4869_p13 = scmp.ge.s32.totalorder %s3862_s30, 2 }
 0x6af   : > { %s2186_s21 = sand.u32 1, %s4866_s12   ;;  %p4868_p2 = scmp.ne.s32.totalorder %s4867_s19, 0 }
 0x6b0   : > { %s2187_s11 = scalar_lea.sflag [#allocation4], %s2186_s21 }
 0x6b1   : > { %p3573_p10 = pnand %p4869_p13, %p4868_p2 }
 0x6b3   : > { %3845 = dma.done.wait (!%p3573_p10), %s2187_s11, 2048  }
 0x6b4   : > { %3847 = vsyncadd (!%p3573_p10), %s2187_s11, 4294965248  ;;  %p23_p0 = scmp.ge.s32.totalorder %s4080_s16, 4   ;;  %s4870_s27 = smov %s3854_s28 }
 0x6b5   : > { %s4871_s28 = smov %s3858_s29  ;;  %s4872_s29 = smov %s4096_s24 }
 0x6b6   : > { %s4873_s30 = smov %s4080_s16  ;;  %25 = sbr.rel (!%p23_p0) target bundleno = 7 (0x7), region = 114 }
 0x6bd   :  { %2192 = vsyncpa [#allocation3], 1 }
 0x6be   :  { %2194 = vsyncpa [#allocation3 + $0x1], 1 }
 0x6bf   :  { %2195 = vsyncpa [#allocation6], 1 }
 0x6c0   :  { %2197 = vsyncpa [#allocation6 + $0x1], 1 }
 0x6c1   :  { %2198 = vsyncpa [#allocation9], 1 }
 0x6c2   :  { %2199 = vsyncpa [#allocation4], 1 }
 0x6c3   :  { %2201 = vsyncpa [#allocation4 + $0x1], 1 }

</bundles_post_ra>
